<compile_context>
chip_gen: v7x
topology: tpu7x:2x2x1
jax: 0.10.0
libtpu: 0.0.40
codegen_flags: <defaults>
</compile_context>

<pallas_src>
import functools

import jax
import jax.numpy as jnp
import numpy as np
from jax import lax
from jax.experimental import pallas as pl
from jax.experimental.pallas import tpu as pltpu


def _transition_kernel(x_ref, w_ref, b_ref, o_ref, *, alpha):
    f32 = jnp.float32
    bf16 = jnp.bfloat16
    Bt, two_l2, C = x_ref.shape
    L2 = two_l2 // 2
    M = Bt * L2            # rows at the downsampled length
    C2 = 2 * C
    G = C // 128           # conv2/conv3 groups (PyTorch: groups = channels // 128)

    # ---- packed weights (bf16) / biases (f32) -------------------------------
    # lane layout: [ w1(C) | w2 taps 0,1,2 (128 each) | w3 taps 0,1,2 (128 each)
    #              | w4(2C) | ws(2C) ]
    w1 = w_ref[:, 0:C]
    w2t = [w_ref[:, C + 128 * t: C + 128 * (t + 1)] for t in range(3)]
    w3t = [w_ref[:, C + 384 + 128 * t: C + 384 + 128 * (t + 1)] for t in range(3)]
    w4 = w_ref[:, C + 768: 3 * C + 768]
    ws = w_ref[:, 3 * C + 768: 5 * C + 768]

    b1 = b_ref[:, 0:C]
    b2 = b_ref[:, C:2 * C]
    b3 = b_ref[:, 2 * C:3 * C]
    b4 = b_ref[:, 3 * C:5 * C]
    bs = b_ref[:, 5 * C:7 * C]

    def mm(a, w):
        # bf16 x bf16 MXU matmul, f32 accumulation.
        return jnp.dot(a.astype(bf16), w, preferred_element_type=f32)

    def gmm(a, w_col):
        # Grouped 1x1 tap: a (M, C); w_col (C, 128) holds G stacked per-group
        # (in=128, out=128) blocks.  No block-diagonal densification.
        a16 = a.astype(bf16)
        outs = [
            jnp.dot(a16[:, g * 128:(g + 1) * 128],
                    w_col[g * 128:(g + 1) * 128, :],
                    preferred_element_type=f32)
            for g in range(G)
        ]
        return outs[0] if G == 1 else jnp.concatenate(outs, axis=1)

    relu = lambda v: jnp.maximum(v, 0.0)

    # per-sample +/-1-row shifts on the (M, C) downsampled grid (zero at the
    # per-sample boundary row, no leakage between samples in the batch tile).
    def shift_down(v):        # out[j] = v[j-1], out[0] = 0   (per sample)
        n = v.shape[1]
        v3 = v.reshape(Bt, L2, n)
        v3 = jnp.concatenate(
            [jnp.zeros((Bt, 1, n), v.dtype), v3[:, :L2 - 1, :]], axis=1)
        return v3.reshape(M, n)

    def shift_up(v):          # out[j] = v[j+1], out[L2-1] = 0 (per sample)
        n = v.shape[1]
        v3 = v.reshape(Bt, L2, n)
        v3 = jnp.concatenate(
            [v3[:, 1:, :], jnp.zeros((Bt, 1, n), v.dtype)], axis=1)
        return v3.reshape(M, n)

    # ---- preprocess: Rescale(1/beta) + ReLU (1/beta folded into w1 / ws) ----
    h3 = relu(x_ref[...].astype(f32))          # (Bt, 2*L2, C), rows [0:L2]=even
    h = h3.reshape(Bt * two_l2, C)

    # ---- residual branch ----------------------------------------------------
    # conv1 (1x1): both streams of all Bt samples in one MXU call.
    r1 = relu(mm(h, w1) + b1)                  # (Bt*2*L2, C)
    r1_3 = r1.reshape(Bt, two_l2, C)
    r1e = r1_3[:, :L2, :].reshape(M, C)
    r1o = r1_3[:, L2:, :].reshape(M, C)

    # conv2: k=3, stride=2, pad=1:
    #   out[j] = w2_0 . r1[2j-1] + w2_1 . r1[2j] + w2_2 . r1[2j+1]
    r2 = relu(shift_down(gmm(r1o, w2t[0]))
              + gmm(r1e, w2t[1])
              + gmm(r1o, w2t[2]) + b2)

    # conv3: k=3, stride=1, pad=1 on the downsampled length.
    r3 = relu(shift_down(gmm(r2, w3t[0]))
              + gmm(r2, w3t[1])
              + shift_up(gmm(r2, w3t[2])) + b3)

    # conv4: 1x1, C -> 2C.
    r4 = (mm(r3, w4) + b4).reshape(Bt, L2, C2)

    # SE gate (parameter-free placeholder, see TODO) with alpha folded in:
    # one (Bt,1,2C) row multiply instead of a full (M,2C) alpha multiply.
    gate = alpha * jax.nn.sigmoid(jnp.mean(r4, axis=1, keepdims=True))
    residual = r4 * gate

    # ---- skip: AvgPool1d(2) + 1x1 conv C -> 2C (1/beta folded into ws) ------
    he = h3[:, :L2, :].reshape(M, C)
    ho = h3[:, L2:, :].reshape(M, C)
    pool = (he + ho) * 0.5
    skip = (mm(pool, ws) + bs).reshape(Bt, L2, C2)

    o_ref[...] = (residual + skip).astype(o_ref.dtype)


def _vmem_limit_bytes():
    """Per-generation VMEM limit (capacity minus headroom, capped) instead of a
    hard-coded 64 MiB (which is the whole physical VMEM of a v7x TensorCore)."""
    mib = 1024 * 1024
    try:
        cap = pltpu.get_tpu_info().vmem_capacity_bytes
    except Exception:
        cap = 64 * mib            # conservative fallback (v7x-sized)
    return int(max(32 * mib, min(cap - 16 * mib, 100 * mib)))


def _pick_batch_tile(B, L2, C):
    """Samples per grid step: feed the MXU a larger M when L is short, keep the
    per-step f32 working set bounded, and keep >=2 grid steps when possible so
    both v7x TensorCores get a share of the 'parallel' batch axis."""
    if L2 % 8 != 0:               # in-kernel per-sample reshapes need 8-row alignment
        return 1
    max_rows = min(1024, (2 * 1024 * 1024) // (4 * C))
    bt = 1
    for cand in range(1, B + 1):
        if B % cand == 0 and cand * 2 * L2 <= max_rows:
            bt = cand
    while B // bt < 2 and bt > 1 and bt % 2 == 0:
        bt //= 2
    return bt


def transition_block(x_ncl, w_packed, b_packed, *, alpha=0.2):
    """x_ncl: (B, C, L) float32 (PyTorch NCL). Returns (B, 2C, L//2) float32."""
    B, C, L = x_ncl.shape
    assert C % 128 == 0, "module uses groups = channels // 128"
    assert L % 2 == 0, "length must be even (stride-2 conv vs AvgPool1d(2))"
    L2 = L // 2
    C2 = 2 * C
    assert w_packed.shape == (C, 5 * C + 768)
    assert b_packed.shape == (1, 7 * C)

    # NCL -> (B, 2*L2, C) bf16 stack (rows [0:L2]=even positions, [L2:]=odd),
    # with the f32->bf16 cast fused into the single XLA transpose.
    # TODO(synk): if the surrounding network can produce/consume channels-last
    # bf16 activations, both wrapper transposes disappear entirely.
    x_stack = jnp.transpose(
        x_ncl.astype(jnp.bfloat16).reshape(B, C, L2, 2), (0, 3, 2, 1)
    ).reshape(B, 2 * L2, C)

    bt = _pick_batch_tile(B, L2, C)
    kernel = functools.partial(_transition_kernel, alpha=alpha)

    flops = B * (2 * (2 * L2) * C * C          # conv1
                 + 2 * 3 * L2 * C * 128        # conv2 (3 grouped taps)
                 + 2 * 3 * L2 * C * 128        # conv3
                 + 2 * L2 * C * C2             # conv4
                 + 2 * L2 * C * C2)            # skip conv
    bytes_acc = int(x_stack.size * 2 + B * L2 * C2 * 2
                    + w_packed.size * 2 + b_packed.size * 4)

    def build(fancy):
        const_kw = {}
        extra_kw = {}
        if fancy:
            # grid-invariant weight/bias blocks -> single-buffered.
            const_kw = dict(pipeline_mode=pl.Buffered(1))
            extra_kw = dict(cost_estimate=pl.CostEstimate(
                flops=flops, transcendentals=B * C2, bytes_accessed=bytes_acc))
        return pl.pallas_call(
            kernel,
            out_shape=jax.ShapeDtypeStruct((B, L2, C2), jnp.bfloat16),
            grid=(B // bt,),
            in_specs=[
                pl.BlockSpec((bt, 2 * L2, C), lambda b: (b, 0, 0)),      # x stack
                pl.BlockSpec((C, 5 * C + 768), lambda b: (0, 0), **const_kw),  # packed W
                pl.BlockSpec((1, 7 * C), lambda b: (0, 0), **const_kw),        # packed b
            ],
            out_specs=pl.BlockSpec((bt, L2, C2), lambda b: (b, 0, 0)),
            compiler_params=pltpu.CompilerParams(
                dimension_semantics=("parallel",),
                vmem_limit_bytes=_vmem_limit_bytes()),
            **extra_kw,
        )

    try:
        out = build(True)(x_stack, w_packed, b_packed)
    except Exception:
        # Fallback for JAX builds without BlockSpec.pipeline_mode / CostEstimate.
        out = build(False)(x_stack, w_packed, b_packed)

    # back to PyTorch NCL; bf16->f32 convert fused into the transpose.
    return jnp.transpose(out, (0, 2, 1)).astype(jnp.float32)


# ---------------- parameter setup (deterministic, PyTorch-shaped) -------------

def init_params(key, channels):
    C = channels
    groups = C // 128
    ks = jax.random.split(key, 10)

    def w(k, shape, scale=0.05):
        return scale * jax.random.normal(k, shape, jnp.float32)

    return dict(
        w1=w(ks[0], (C, C, 1)), b1=w(ks[1], (C,)),
        w2=w(ks[2], (C, C // groups, 3)), b2=w(ks[3], (C,)),
        w3=w(ks[4], (C, C // groups, 3)), b3=w(ks[5], (C,)),
        w4=w(ks[6], (2 * C, C, 1)), b4=w(ks[7], (2 * C,)),
        ws=w(ks[8], (2 * C, C, 1)), bs=w(ks[9], (2 * C,)),
        groups=groups,
    )


def pack_params(p, beta):
    """PyTorch-layout params -> packed bf16 weight (C, 5C+768) + f32 bias (1, 7C).

    conv2/conv3 grouped weights stay grouped: each tap is a (C, 128) stack of
    per-group (in=128, out=128) blocks (no block-diagonal densification)."""
    assert beta > 0            # inv_beta fold uses relu(c*x) = c*relu(x), c > 0
    inv_beta = 1.0 / beta
    groups = p['groups']
    C = p['w1'].shape[0]
    og = C // groups           # = 128

    def gtap(w, t):
        blocks = [w[g * og:(g + 1) * og, :, t].T for g in range(groups)]
        return jnp.concatenate(blocks, axis=0)          # (C, 128)

    w1 = p['w1'][:, :, 0].T * inv_beta                   # (C, C)
    w4 = p['w4'][:, :, 0].T                               # (C, 2C)
    ws = p['ws'][:, :, 0].T * inv_beta                    # (C, 2C)
    w_packed = jnp.concatenate(
        [w1,
         gtap(p['w2'], 0), gtap(p['w2'], 1), gtap(p['w2'], 2),
         gtap(p['w3'], 0), gtap(p['w3'], 1), gtap(p['w3'], 2),
         w4, ws], axis=1).astype(jnp.bfloat16)            # (C, 5C + 768)
    b_packed = jnp.concatenate(
        [p['b1'], p['b2'], p['b3'], p['b4'], p['bs']]
    )[None, :].astype(jnp.float32)                        # (1, 7C)
    return w_packed, b_packed


# ---------------- pure-JAX reference (PyTorch semantics, NCL layout) ----------

def ref_forward(x_ncl, p, beta, alpha):
    def conv(x, w, b, stride=1, pad=0, groups=1):
        y = lax.conv_general_dilated(
            x, w, window_strides=(stride,), padding=[(pad, pad)],
            dimension_numbers=('NCH', 'OIH', 'NCH'),
            feature_group_count=groups, precision=lax.Precision.HIGHEST)
        return y + b[None, :, None]

    relu = jax.nn.relu
    h = relu(x_ncl / beta)
    r = relu(conv(h, p['w1'], p['b1']))
    r = relu(conv(r, p['w2'], p['b2'], stride=2, pad=1, groups=p['groups']))
    r = relu(conv(r, p['w3'], p['b3'], stride=1, pad=1, groups=p['groups']))
    r = conv(r, p['w4'], p['b4'])
    gate = jax.nn.sigmoid(jnp.mean(r, axis=2, keepdims=True))
    r = (r * gate) * alpha
    hpool = (h[:, :, 0::2] + h[:, :, 1::2]) * 0.5
    s = conv(hpool, p['ws'], p['bs'])
    return r + s


if __name__ == "__main__":
    key = jax.random.PRNGKey(0)
    beta, alpha = 2.0, 0.2

    # Case 1: groups == 1, exercises batch tiling (Bt=2) across sample boundaries.
    # Case 2: groups == 2, exercises the grouped (non-densified) conv2/conv3 path.
    for (B, C, L) in [(4, 128, 16), (2, 256, 16)]:
        kx, kp, key = jax.random.split(key, 3)
        x = jax.random.normal(kx, (B, C, L), jnp.float32)
        p = init_params(kp, C)
        w_packed, b_packed = pack_params(p, beta)

        out = transition_block(x, w_packed, b_packed, alpha=alpha)
        out = jax.block_until_ready(out)
        assert out.shape == (B, 2 * C, L // 2)

        ref = ref_forward(x, p, beta, alpha)
        # bf16 activations/weights on the MXU vs f32-HIGHEST reference.
        np.testing.assert_allclose(np.asarray(out), np.asarray(ref),
                                   rtol=2e-2, atol=1e-2)
    print("KERNEL_OK")
</pallas_src>

<mosaic_0001>
module attributes {stable_mosaic.version = 11 : i64} {
  func.func @_transition_kernel(%arg0: i32, %arg1: memref<2x16x128xbf16, #tpu.memory_space<vmem>>, %arg2: memref<128x1408xbf16, #tpu.memory_space<vmem>>, %arg3: memref<1x896xf32, #tpu.memory_space<vmem>>, %arg4: memref<2x8x256xbf16, #tpu.memory_space<vmem>>) attributes {dimension_semantics = [#tpu.dimension_semantics<parallel>], iteration_bounds = array<i64: 2>, scalar_prefetch = 0 : i64, scratch_operands = 0 : i64, tpu.core_type = #tpu.core_type<tc>, window_params = [{transform_indices = @transform_0, window_bounds = array<i64: 2, 16, 128>}, {pipeline_mode = #tpu.pipeline_mode<synchronous>, transform_indices = @transform_1, window_bounds = array<i64: 128, 1408>}, {pipeline_mode = #tpu.pipeline_mode<synchronous>, transform_indices = @transform_2, window_bounds = array<i64: 1, 896>}, {transform_indices = @transform_3, window_bounds = array<i64: 2, 8, 256>}]} {
    %c0 = arith.constant 0 : index
    %c0_0 = arith.constant 0 : index
    %0 = vector.load %arg2[%c0, %c0_0] : memref<128x1408xbf16, #tpu.memory_space<vmem>>, vector<128x128xbf16>
    %c0_1 = arith.constant 0 : index
    %c128 = arith.constant 128 : index
    %1 = vector.load %arg2[%c0_1, %c128] : memref<128x1408xbf16, #tpu.memory_space<vmem>>, vector<128x128xbf16>
    %c0_2 = arith.constant 0 : index
    %c256 = arith.constant 256 : index
    %2 = vector.load %arg2[%c0_2, %c256] : memref<128x1408xbf16, #tpu.memory_space<vmem>>, vector<128x128xbf16>
    %c0_3 = arith.constant 0 : index
    %c384 = arith.constant 384 : index
    %3 = vector.load %arg2[%c0_3, %c384] : memref<128x1408xbf16, #tpu.memory_space<vmem>>, vector<128x128xbf16>
    %c0_4 = arith.constant 0 : index
    %c512 = arith.constant 512 : index
    %4 = vector.load %arg2[%c0_4, %c512] : memref<128x1408xbf16, #tpu.memory_space<vmem>>, vector<128x128xbf16>
    %c0_5 = arith.constant 0 : index
    %c640 = arith.constant 640 : index
    %5 = vector.load %arg2[%c0_5, %c640] : memref<128x1408xbf16, #tpu.memory_space<vmem>>, vector<128x128xbf16>
    %c0_6 = arith.constant 0 : index
    %c768 = arith.constant 768 : index
    %6 = vector.load %arg2[%c0_6, %c768] : memref<128x1408xbf16, #tpu.memory_space<vmem>>, vector<128x128xbf16>
    %c0_7 = arith.constant 0 : index
    %c896 = arith.constant 896 : index
    %7 = vector.load %arg2[%c0_7, %c896] : memref<128x1408xbf16, #tpu.memory_space<vmem>>, vector<128x256xbf16>
    %c0_8 = arith.constant 0 : index
    %c1152 = arith.constant 1152 : index
    %8 = vector.load %arg2[%c0_8, %c1152] : memref<128x1408xbf16, #tpu.memory_space<vmem>>, vector<128x256xbf16>
    %c0_9 = arith.constant 0 : index
    %c0_10 = arith.constant 0 : index
    %9 = vector.load %arg3[%c0_9, %c0_10] : memref<1x896xf32, #tpu.memory_space<vmem>>, vector<1x128xf32>
    %c0_11 = arith.constant 0 : index
    %c128_12 = arith.constant 128 : index
    %10 = vector.load %arg3[%c0_11, %c128_12] : memref<1x896xf32, #tpu.memory_space<vmem>>, vector<1x128xf32>
    %c0_13 = arith.constant 0 : index
    %c256_14 = arith.constant 256 : index
    %11 = vector.load %arg3[%c0_13, %c256_14] : memref<1x896xf32, #tpu.memory_space<vmem>>, vector<1x128xf32>
    %c0_15 = arith.constant 0 : index
    %c384_16 = arith.constant 384 : index
    %12 = vector.load %arg3[%c0_15, %c384_16] : memref<1x896xf32, #tpu.memory_space<vmem>>, vector<1x256xf32>
    %c0_17 = arith.constant 0 : index
    %c640_18 = arith.constant 640 : index
    %13 = vector.load %arg3[%c0_17, %c640_18] : memref<1x896xf32, #tpu.memory_space<vmem>>, vector<1x256xf32>
    %c0_19 = arith.constant 0 : index
    %c0_20 = arith.constant 0 : index
    %c0_21 = arith.constant 0 : index
    %14 = vector.load %arg1[%c0_19, %c0_20, %c0_21] : memref<2x16x128xbf16, #tpu.memory_space<vmem>>, vector<2x16x128xbf16>
    %15 = arith.extf %14 : vector<2x16x128xbf16> to vector<2x16x128xf32>
    %cst = arith.constant 0.000000e+00 : f32
    %16 = vector.broadcast %cst : f32 to vector<2x16x128xf32>
    %17 = arith.maximumf %15, %16 : vector<2x16x128xf32>
    %18 = vector.shape_cast %17 : vector<2x16x128xf32> to vector<32x128xf32>
    %19 = arith.truncf %18 : vector<32x128xf32> to vector<32x128xbf16>
    %cst_22 = arith.constant dense<0.000000e+00> : vector<32x128xf32>
    %20 = tpu.matmul %19, %0, %cst_22 {dimension_numbers = #tpu.dot_dimension_numbers<[1], [0], [0], [1], [0, 0, 1, 1], [], []>} : vector<32x128xbf16>, vector<128x128xbf16>, vector<32x128xf32> -> vector<32x128xf32>
    %21 = vector.broadcast %9 : vector<1x128xf32> to vector<32x128xf32>
    %22 = arith.addf %20, %21 : vector<32x128xf32>
    %cst_23 = arith.constant 0.000000e+00 : f32
    %23 = vector.broadcast %cst_23 : f32 to vector<32x128xf32>
    %24 = arith.maximumf %22, %23 : vector<32x128xf32>
    %25 = vector.shape_cast %24 : vector<32x128xf32> to vector<2x16x128xf32>
    %26 = vector.extract_strided_slice %25 {offsets = [0, 0, 0], sizes = [2, 8, 128], strides = [1, 1, 1]} : vector<2x16x128xf32> to vector<2x8x128xf32>
    %27 = vector.shape_cast %26 : vector<2x8x128xf32> to vector<16x128xf32>
    %28 = vector.extract_strided_slice %25 {offsets = [0, 8, 0], sizes = [2, 8, 128], strides = [1, 1, 1]} : vector<2x16x128xf32> to vector<2x8x128xf32>
    %29 = vector.shape_cast %28 : vector<2x8x128xf32> to vector<16x128xf32>
    %30 = arith.truncf %29 : vector<16x128xf32> to vector<16x128xbf16>
    %cst_24 = arith.constant dense<0.000000e+00> : vector<16x128xf32>
    %31 = tpu.matmul %30, %1, %cst_24 {dimension_numbers = #tpu.dot_dimension_numbers<[1], [0], [0], [1], [0, 0, 1, 1], [], []>} : vector<16x128xbf16>, vector<128x128xbf16>, vector<16x128xf32> -> vector<16x128xf32>
    %32 = vector.shape_cast %31 : vector<16x128xf32> to vector<2x8x128xf32>
    %cst_25 = arith.constant 0.000000e+00 : f32
    %33 = vector.broadcast %cst_25 : f32 to vector<2x1x128xf32>
    %34 = vector.extract_strided_slice %32 {offsets = [0, 0, 0], sizes = [2, 7, 128], strides = [1, 1, 1]} : vector<2x8x128xf32> to vector<2x7x128xf32>
    %35 = tpu.concatenate %33, %34 in 1 : vector<2x1x128xf32>, vector<2x7x128xf32> -> vector<2x8x128xf32>
    %36 = vector.shape_cast %35 : vector<2x8x128xf32> to vector<16x128xf32>
    %37 = arith.truncf %27 : vector<16x128xf32> to vector<16x128xbf16>
    %cst_26 = arith.constant dense<0.000000e+00> : vector<16x128xf32>
    %38 = tpu.matmul %37, %2, %cst_26 {dimension_numbers = #tpu.dot_dimension_numbers<[1], [0], [0], [1], [0, 0, 1, 1], [], []>} : vector<16x128xbf16>, vector<128x128xbf16>, vector<16x128xf32> -> vector<16x128xf32>
    %39 = arith.addf %36, %38 : vector<16x128xf32>
    %40 = arith.truncf %29 : vector<16x128xf32> to vector<16x128xbf16>
    %cst_27 = arith.constant dense<0.000000e+00> : vector<16x128xf32>
    %41 = tpu.matmul %40, %3, %cst_27 {dimension_numbers = #tpu.dot_dimension_numbers<[1], [0], [0], [1], [0, 0, 1, 1], [], []>} : vector<16x128xbf16>, vector<128x128xbf16>, vector<16x128xf32> -> vector<16x128xf32>
    %42 = arith.addf %39, %41 : vector<16x128xf32>
    %43 = vector.broadcast %10 : vector<1x128xf32> to vector<16x128xf32>
    %44 = arith.addf %42, %43 : vector<16x128xf32>
    %cst_28 = arith.constant 0.000000e+00 : f32
    %45 = vector.broadcast %cst_28 : f32 to vector<16x128xf32>
    %46 = arith.maximumf %44, %45 : vector<16x128xf32>
    %47 = arith.truncf %46 : vector<16x128xf32> to vector<16x128xbf16>
    %cst_29 = arith.constant dense<0.000000e+00> : vector<16x128xf32>
    %48 = tpu.matmul %47, %4, %cst_29 {dimension_numbers = #tpu.dot_dimension_numbers<[1], [0], [0], [1], [0, 0, 1, 1], [], []>} : vector<16x128xbf16>, vector<128x128xbf16>, vector<16x128xf32> -> vector<16x128xf32>
    %49 = vector.shape_cast %48 : vector<16x128xf32> to vector<2x8x128xf32>
    %cst_30 = arith.constant 0.000000e+00 : f32
    %50 = vector.broadcast %cst_30 : f32 to vector<2x1x128xf32>
    %51 = vector.extract_strided_slice %49 {offsets = [0, 0, 0], sizes = [2, 7, 128], strides = [1, 1, 1]} : vector<2x8x128xf32> to vector<2x7x128xf32>
    %52 = tpu.concatenate %50, %51 in 1 : vector<2x1x128xf32>, vector<2x7x128xf32> -> vector<2x8x128xf32>
    %53 = vector.shape_cast %52 : vector<2x8x128xf32> to vector<16x128xf32>
    %54 = arith.truncf %46 : vector<16x128xf32> to vector<16x128xbf16>
    %cst_31 = arith.constant dense<0.000000e+00> : vector<16x128xf32>
    %55 = tpu.matmul %54, %5, %cst_31 {dimension_numbers = #tpu.dot_dimension_numbers<[1], [0], [0], [1], [0, 0, 1, 1], [], []>} : vector<16x128xbf16>, vector<128x128xbf16>, vector<16x128xf32> -> vector<16x128xf32>
    %56 = arith.addf %53, %55 : vector<16x128xf32>
    %57 = arith.truncf %46 : vector<16x128xf32> to vector<16x128xbf16>
    %cst_32 = arith.constant dense<0.000000e+00> : vector<16x128xf32>
    %58 = tpu.matmul %57, %6, %cst_32 {dimension_numbers = #tpu.dot_dimension_numbers<[1], [0], [0], [1], [0, 0, 1, 1], [], []>} : vector<16x128xbf16>, vector<128x128xbf16>, vector<16x128xf32> -> vector<16x128xf32>
    %59 = vector.shape_cast %58 : vector<16x128xf32> to vector<2x8x128xf32>
    %60 = vector.extract_strided_slice %59 {offsets = [0, 1, 0], sizes = [2, 7, 128], strides = [1, 1, 1]} : vector<2x8x128xf32> to vector<2x7x128xf32>
    %cst_33 = arith.constant 0.000000e+00 : f32
    %61 = vector.broadcast %cst_33 : f32 to vector<2x1x128xf32>
    %62 = tpu.concatenate %60, %61 in 1 : vector<2x7x128xf32>, vector<2x1x128xf32> -> vector<2x8x128xf32>
    %63 = vector.shape_cast %62 : vector<2x8x128xf32> to vector<16x128xf32>
    %64 = arith.addf %56, %63 : vector<16x128xf32>
    %65 = vector.broadcast %11 : vector<1x128xf32> to vector<16x128xf32>
    %66 = arith.addf %64, %65 : vector<16x128xf32>
    %cst_34 = arith.constant 0.000000e+00 : f32
    %67 = vector.broadcast %cst_34 : f32 to vector<16x128xf32>
    %68 = arith.maximumf %66, %67 : vector<16x128xf32>
    %69 = arith.truncf %68 : vector<16x128xf32> to vector<16x128xbf16>
    %cst_35 = arith.constant dense<0.000000e+00> : vector<16x256xf32>
    %70 = tpu.matmul %69, %7, %cst_35 {dimension_numbers = #tpu.dot_dimension_numbers<[1], [0], [0], [1], [0, 0, 1, 1], [], []>} : vector<16x128xbf16>, vector<128x256xbf16>, vector<16x256xf32> -> vector<16x256xf32>
    %71 = vector.broadcast %12 : vector<1x256xf32> to vector<16x256xf32>
    %72 = arith.addf %70, %71 : vector<16x256xf32>
    %73 = vector.shape_cast %72 : vector<16x256xf32> to vector<2x8x256xf32>
    %cst_36 = arith.constant dense<0.000000e+00> : vector<2x256xf32>
    %74 = vector.multi_reduction <add>, %73, %cst_36 [1] : vector<2x8x256xf32> to vector<2x256xf32>
    %75 = vector.shape_cast %74 : vector<2x256xf32> to vector<2x1x256xf32>
    %cst_37 = arith.constant 8.000000e+00 : f32
    %76 = vector.broadcast %cst_37 : f32 to vector<2x1x256xf32>
    %77 = arith.divf %75, %76 : vector<2x1x256xf32>
    %78 = arith.negf %77 : vector<2x1x256xf32>
    %79 = math.exp %78 : vector<2x1x256xf32>
    %cst_38 = arith.constant 1.000000e+00 : f32
    %80 = vector.broadcast %cst_38 : f32 to vector<2x1x256xf32>
    %81 = arith.addf %80, %79 : vector<2x1x256xf32>
    %82 = arith.divf %80, %81 : vector<2x1x256xf32>
    %cst_39 = arith.constant 2.000000e-01 : f32
    %83 = vector.broadcast %cst_39 : f32 to vector<2x1x256xf32>
    %84 = arith.mulf %83, %82 : vector<2x1x256xf32>
    %85 = vector.broadcast %84 : vector<2x1x256xf32> to vector<2x8x256xf32>
    %86 = arith.mulf %73, %85 : vector<2x8x256xf32>
    %87 = vector.extract_strided_slice %17 {offsets = [0, 0, 0], sizes = [2, 8, 128], strides = [1, 1, 1]} : vector<2x16x128xf32> to vector<2x8x128xf32>
    %88 = vector.shape_cast %87 : vector<2x8x128xf32> to vector<16x128xf32>
    %89 = vector.extract_strided_slice %17 {offsets = [0, 8, 0], sizes = [2, 8, 128], strides = [1, 1, 1]} : vector<2x16x128xf32> to vector<2x8x128xf32>
    %90 = vector.shape_cast %89 : vector<2x8x128xf32> to vector<16x128xf32>
    %91 = arith.addf %88, %90 : vector<16x128xf32>
    %cst_40 = arith.constant 5.000000e-01 : f32
    %92 = vector.broadcast %cst_40 : f32 to vector<16x128xf32>
    %93 = arith.mulf %91, %92 : vector<16x128xf32>
    %94 = arith.truncf %93 : vector<16x128xf32> to vector<16x128xbf16>
    %cst_41 = arith.constant dense<0.000000e+00> : vector<16x256xf32>
    %95 = tpu.matmul %94, %8, %cst_41 {dimension_numbers = #tpu.dot_dimension_numbers<[1], [0], [0], [1], [0, 0, 1, 1], [], []>} : vector<16x128xbf16>, vector<128x256xbf16>, vector<16x256xf32> -> vector<16x256xf32>
    %96 = vector.broadcast %13 : vector<1x256xf32> to vector<16x256xf32>
    %97 = arith.addf %95, %96 : vector<16x256xf32>
    %98 = vector.shape_cast %97 : vector<16x256xf32> to vector<2x8x256xf32>
    %99 = arith.addf %86, %98 : vector<2x8x256xf32>
    %100 = arith.truncf %99 : vector<2x8x256xf32> to vector<2x8x256xbf16>
    %c0_42 = arith.constant 0 : index
    %c0_43 = arith.constant 0 : index
    %c0_44 = arith.constant 0 : index
    %101 = vector.load %arg4[%c0_42, %c0_43, %c0_44] : memref<2x8x256xbf16, #tpu.memory_space<vmem>>, vector<2x8x256xbf16>
    tpu.vector_store %arg4[%c0_42, %c0_43, %c0_44], %100 {strides = array<i32>} : memref<2x8x256xbf16, #tpu.memory_space<vmem>>, vector<2x8x256xbf16>,
    return
  }
  func.func @transform_0(%arg0: i32) -> (i32, i32, i32) {
    %c0_i32 = arith.constant 0 : i32
    %c0_i32_0 = arith.constant 0 : i32
    %c0_i32_1 = arith.constant 0 : i32
    return %arg0, %c0_i32, %c0_i32_0 : i32, i32, i32
  }
  func.func @transform_1(%arg0: i32) -> (i32, i32) {
    %c0_i32 = arith.constant 0 : i32
    %c0_i32_0 = arith.constant 0 : i32
    %c0_i32_1 = arith.constant 0 : i32
    return %c0_i32, %c0_i32_0 : i32, i32
  }
  func.func @transform_2(%arg0: i32) -> (i32, i32) {
    %c0_i32 = arith.constant 0 : i32
    %c0_i32_0 = arith.constant 0 : i32
    %c0_i32_1 = arith.constant 0 : i32
    return %c0_i32, %c0_i32_0 : i32, i32
  }
  func.func @transform_3(%arg0: i32) -> (i32, i32, i32) {
    %c0_i32 = arith.constant 0 : i32
    %c0_i32_0 = arith.constant 0 : i32
    %c0_i32_1 = arith.constant 0 : i32
    return %arg0, %c0_i32, %c0_i32_0 : i32, i32, i32
  }
}

module attributes {stable_mosaic.version = 11 : i64} {
  func.func @_transition_kernel(%arg0: i32, %arg1: memref<2x16x128xbf16, #tpu.memory_space<vmem>>, %arg2: memref<128x1408xbf16, #tpu.memory_space<vmem>>, %arg3: memref<1x896xf32, #tpu.memory_space<vmem>>, %arg4: memref<2x8x256xbf16, #tpu.memory_space<vmem>>) attributes {dimension_semantics = [#tpu.dimension_semantics<parallel>], iteration_bounds = array<i64: 2>, scalar_prefetch = 0 : i64, scratch_operands = 0 : i64, tpu.core_type = #tpu.core_type<tc>, window_params = [{transform_indices = @transform_0, window_bounds = array<i64: 2, 16, 128>}, {pipeline_mode = #tpu.pipeline_mode<synchronous>, transform_indices = @transform_1, window_bounds = array<i64: 128, 1408>}, {pipeline_mode = #tpu.pipeline_mode<synchronous>, transform_indices = @transform_2, window_bounds = array<i64: 1, 896>}, {transform_indices = @transform_3, window_bounds = array<i64: 2, 8, 256>}]} {
    %c0 = arith.constant 0 : index
    %c0_0 = arith.constant 0 : index
    %0 = vector.load %arg2[%c0, %c0_0] : memref<128x1408xbf16, #tpu.memory_space<vmem>>, vector<128x128xbf16>
    %c0_1 = arith.constant 0 : index
    %c128 = arith.constant 128 : index
    %1 = vector.load %arg2[%c0_1, %c128] : memref<128x1408xbf16, #tpu.memory_space<vmem>>, vector<128x128xbf16>
    %c0_2 = arith.constant 0 : index
    %c256 = arith.constant 256 : index
    %2 = vector.load %arg2[%c0_2, %c256] : memref<128x1408xbf16, #tpu.memory_space<vmem>>, vector<128x128xbf16>
    %c0_3 = arith.constant 0 : index
    %c384 = arith.constant 384 : index
    %3 = vector.load %arg2[%c0_3, %c384] : memref<128x1408xbf16, #tpu.memory_space<vmem>>, vector<128x128xbf16>
    %c0_4 = arith.constant 0 : index
    %c512 = arith.constant 512 : index
    %4 = vector.load %arg2[%c0_4, %c512] : memref<128x1408xbf16, #tpu.memory_space<vmem>>, vector<128x128xbf16>
    %c0_5 = arith.constant 0 : index
    %c640 = arith.constant 640 : index
    %5 = vector.load %arg2[%c0_5, %c640] : memref<128x1408xbf16, #tpu.memory_space<vmem>>, vector<128x128xbf16>
    %c0_6 = arith.constant 0 : index
    %c768 = arith.constant 768 : index
    %6 = vector.load %arg2[%c0_6, %c768] : memref<128x1408xbf16, #tpu.memory_space<vmem>>, vector<128x128xbf16>
    %c0_7 = arith.constant 0 : index
    %c896 = arith.constant 896 : index
    %7 = vector.load %arg2[%c0_7, %c896] : memref<128x1408xbf16, #tpu.memory_space<vmem>>, vector<128x256xbf16>
    %c0_8 = arith.constant 0 : index
    %c1152 = arith.constant 1152 : index
    %8 = vector.load %arg2[%c0_8, %c1152] : memref<128x1408xbf16, #tpu.memory_space<vmem>>, vector<128x256xbf16>
    %c0_9 = arith.constant 0 : index
    %c0_10 = arith.constant 0 : index
    %9 = vector.load %arg3[%c0_9, %c0_10] : memref<1x896xf32, #tpu.memory_space<vmem>>, vector<1x128xf32>
    %c0_11 = arith.constant 0 : index
    %c128_12 = arith.constant 128 : index
    %10 = vector.load %arg3[%c0_11, %c128_12] : memref<1x896xf32, #tpu.memory_space<vmem>>, vector<1x128xf32>
    %c0_13 = arith.constant 0 : index
    %c256_14 = arith.constant 256 : index
    %11 = vector.load %arg3[%c0_13, %c256_14] : memref<1x896xf32, #tpu.memory_space<vmem>>, vector<1x128xf32>
    %c0_15 = arith.constant 0 : index
    %c384_16 = arith.constant 384 : index
    %12 = vector.load %arg3[%c0_15, %c384_16] : memref<1x896xf32, #tpu.memory_space<vmem>>, vector<1x256xf32>
    %c0_17 = arith.constant 0 : index
    %c640_18 = arith.constant 640 : index
    %13 = vector.load %arg3[%c0_17, %c640_18] : memref<1x896xf32, #tpu.memory_space<vmem>>, vector<1x256xf32>
    %c0_19 = arith.constant 0 : index
    %c0_20 = arith.constant 0 : index
    %c0_21 = arith.constant 0 : index
    %14 = vector.load %arg1[%c0_19, %c0_20, %c0_21] : memref<2x16x128xbf16, #tpu.memory_space<vmem>>, vector<2x16x128xbf16>
    %15 = arith.extf %14 : vector<2x16x128xbf16> to vector<2x16x128xf32>
    %cst = arith.constant 0.000000e+00 : f32
    %16 = vector.broadcast %cst : f32 to vector<2x16x128xf32>
    %17 = arith.maximumf %15, %16 : vector<2x16x128xf32>
    %18 = vector.shape_cast %17 : vector<2x16x128xf32> to vector<32x128xf32>
    %19 = arith.truncf %18 : vector<32x128xf32> to vector<32x128xbf16>
    %cst_22 = arith.constant dense<0.000000e+00> : vector<32x128xf32>
    %20 = tpu.matmul %19, %0, %cst_22 {dimension_numbers = #tpu.dot_dimension_numbers<[1], [0], [0], [1], [0, 0, 1, 1], [], []>} : vector<32x128xbf16>, vector<128x128xbf16>, vector<32x128xf32> -> vector<32x128xf32>
    %21 = vector.broadcast %9 : vector<1x128xf32> to vector<32x128xf32>
    %22 = arith.addf %20, %21 : vector<32x128xf32>
    %cst_23 = arith.constant 0.000000e+00 : f32
    %23 = vector.broadcast %cst_23 : f32 to vector<32x128xf32>
    %24 = arith.maximumf %22, %23 : vector<32x128xf32>
    %25 = vector.shape_cast %24 : vector<32x128xf32> to vector<2x16x128xf32>
    %26 = vector.extract_strided_slice %25 {offsets = [0, 0, 0], sizes = [2, 8, 128], strides = [1, 1, 1]} : vector<2x16x128xf32> to vector<2x8x128xf32>
    %27 = vector.shape_cast %26 : vector<2x8x128xf32> to vector<16x128xf32>
    %28 = vector.extract_strided_slice %25 {offsets = [0, 8, 0], sizes = [2, 8, 128], strides = [1, 1, 1]} : vector<2x16x128xf32> to vector<2x8x128xf32>
    %29 = vector.shape_cast %28 : vector<2x8x128xf32> to vector<16x128xf32>
    %30 = arith.truncf %29 : vector<16x128xf32> to vector<16x128xbf16>
    %cst_24 = arith.constant dense<0.000000e+00> : vector<16x128xf32>
    %31 = tpu.matmul %30, %1, %cst_24 {dimension_numbers = #tpu.dot_dimension_numbers<[1], [0], [0], [1], [0, 0, 1, 1], [], []>} : vector<16x128xbf16>, vector<128x128xbf16>, vector<16x128xf32> -> vector<16x128xf32>
    %32 = vector.shape_cast %31 : vector<16x128xf32> to vector<2x8x128xf32>
    %cst_25 = arith.constant 0.000000e+00 : f32
    %33 = vector.broadcast %cst_25 : f32 to vector<2x1x128xf32>
    %34 = vector.extract_strided_slice %32 {offsets = [0, 0, 0], sizes = [2, 7, 128], strides = [1, 1, 1]} : vector<2x8x128xf32> to vector<2x7x128xf32>
    %35 = tpu.concatenate %33, %34 in 1 : vector<2x1x128xf32>, vector<2x7x128xf32> -> vector<2x8x128xf32>
    %36 = vector.shape_cast %35 : vector<2x8x128xf32> to vector<16x128xf32>
    %37 = arith.truncf %27 : vector<16x128xf32> to vector<16x128xbf16>
    %cst_26 = arith.constant dense<0.000000e+00> : vector<16x128xf32>
    %38 = tpu.matmul %37, %2, %cst_26 {dimension_numbers = #tpu.dot_dimension_numbers<[1], [0], [0], [1], [0, 0, 1, 1], [], []>} : vector<16x128xbf16>, vector<128x128xbf16>, vector<16x128xf32> -> vector<16x128xf32>
    %39 = arith.addf %36, %38 : vector<16x128xf32>
    %40 = arith.truncf %29 : vector<16x128xf32> to vector<16x128xbf16>
    %cst_27 = arith.constant dense<0.000000e+00> : vector<16x128xf32>
    %41 = tpu.matmul %40, %3, %cst_27 {dimension_numbers = #tpu.dot_dimension_numbers<[1], [0], [0], [1], [0, 0, 1, 1], [], []>} : vector<16x128xbf16>, vector<128x128xbf16>, vector<16x128xf32> -> vector<16x128xf32>
    %42 = arith.addf %39, %41 : vector<16x128xf32>
    %43 = vector.broadcast %10 : vector<1x128xf32> to vector<16x128xf32>
    %44 = arith.addf %42, %43 : vector<16x128xf32>
    %cst_28 = arith.constant 0.000000e+00 : f32
    %45 = vector.broadcast %cst_28 : f32 to vector<16x128xf32>
    %46 = arith.maximumf %44, %45 : vector<16x128xf32>
    %47 = arith.truncf %46 : vector<16x128xf32> to vector<16x128xbf16>
    %cst_29 = arith.constant dense<0.000000e+00> : vector<16x128xf32>
    %48 = tpu.matmul %47, %4, %cst_29 {dimension_numbers = #tpu.dot_dimension_numbers<[1], [0], [0], [1], [0, 0, 1, 1], [], []>} : vector<16x128xbf16>, vector<128x128xbf16>, vector<16x128xf32> -> vector<16x128xf32>
    %49 = vector.shape_cast %48 : vector<16x128xf32> to vector<2x8x128xf32>
    %cst_30 = arith.constant 0.000000e+00 : f32
    %50 = vector.broadcast %cst_30 : f32 to vector<2x1x128xf32>
    %51 = vector.extract_strided_slice %49 {offsets = [0, 0, 0], sizes = [2, 7, 128], strides = [1, 1, 1]} : vector<2x8x128xf32> to vector<2x7x128xf32>
    %52 = tpu.concatenate %50, %51 in 1 : vector<2x1x128xf32>, vector<2x7x128xf32> -> vector<2x8x128xf32>
    %53 = vector.shape_cast %52 : vector<2x8x128xf32> to vector<16x128xf32>
    %54 = arith.truncf %46 : vector<16x128xf32> to vector<16x128xbf16>
    %cst_31 = arith.constant dense<0.000000e+00> : vector<16x128xf32>
    %55 = tpu.matmul %54, %5, %cst_31 {dimension_numbers = #tpu.dot_dimension_numbers<[1], [0], [0], [1], [0, 0, 1, 1], [], []>} : vector<16x128xbf16>, vector<128x128xbf16>, vector<16x128xf32> -> vector<16x128xf32>
    %56 = arith.addf %53, %55 : vector<16x128xf32>
    %57 = arith.truncf %46 : vector<16x128xf32> to vector<16x128xbf16>
    %cst_32 = arith.constant dense<0.000000e+00> : vector<16x128xf32>
    %58 = tpu.matmul %57, %6, %cst_32 {dimension_numbers = #tpu.dot_dimension_numbers<[1], [0], [0], [1], [0, 0, 1, 1], [], []>} : vector<16x128xbf16>, vector<128x128xbf16>, vector<16x128xf32> -> vector<16x128xf32>
    %59 = vector.shape_cast %58 : vector<16x128xf32> to vector<2x8x128xf32>
    %60 = vector.extract_strided_slice %59 {offsets = [0, 1, 0], sizes = [2, 7, 128], strides = [1, 1, 1]} : vector<2x8x128xf32> to vector<2x7x128xf32>
    %cst_33 = arith.constant 0.000000e+00 : f32
    %61 = vector.broadcast %cst_33 : f32 to vector<2x1x128xf32>
    %62 = tpu.concatenate %60, %61 in 1 : vector<2x7x128xf32>, vector<2x1x128xf32> -> vector<2x8x128xf32>
    %63 = vector.shape_cast %62 : vector<2x8x128xf32> to vector<16x128xf32>
    %64 = arith.addf %56, %63 : vector<16x128xf32>
    %65 = vector.broadcast %11 : vector<1x128xf32> to vector<16x128xf32>
    %66 = arith.addf %64, %65 : vector<16x128xf32>
    %cst_34 = arith.constant 0.000000e+00 : f32
    %67 = vector.broadcast %cst_34 : f32 to vector<16x128xf32>
    %68 = arith.maximumf %66, %67 : vector<16x128xf32>
    %69 = arith.truncf %68 : vector<16x128xf32> to vector<16x128xbf16>
    %cst_35 = arith.constant dense<0.000000e+00> : vector<16x256xf32>
    %70 = tpu.matmul %69, %7, %cst_35 {dimension_numbers = #tpu.dot_dimension_numbers<[1], [0], [0], [1], [0, 0, 1, 1], [], []>} : vector<16x128xbf16>, vector<128x256xbf16>, vector<16x256xf32> -> vector<16x256xf32>
    %71 = vector.broadcast %12 : vector<1x256xf32> to vector<16x256xf32>
    %72 = arith.addf %70, %71 : vector<16x256xf32>
    %73 = vector.shape_cast %72 : vector<16x256xf32> to vector<2x8x256xf32>
    %cst_36 = arith.constant dense<0.000000e+00> : vector<2x256xf32>
    %74 = vector.multi_reduction <add>, %73, %cst_36 [1] : vector<2x8x256xf32> to vector<2x256xf32>
    %75 = vector.shape_cast %74 : vector<2x256xf32> to vector<2x1x256xf32>
    %cst_37 = arith.constant 8.000000e+00 : f32
    %76 = vector.broadcast %cst_37 : f32 to vector<2x1x256xf32>
    %77 = arith.divf %75, %76 : vector<2x1x256xf32>
    %78 = arith.negf %77 : vector<2x1x256xf32>
    %79 = math.exp %78 : vector<2x1x256xf32>
    %cst_38 = arith.constant 1.000000e+00 : f32
    %80 = vector.broadcast %cst_38 : f32 to vector<2x1x256xf32>
    %81 = arith.addf %80, %79 : vector<2x1x256xf32>
    %82 = arith.divf %80, %81 : vector<2x1x256xf32>
    %cst_39 = arith.constant 2.000000e-01 : f32
    %83 = vector.broadcast %cst_39 : f32 to vector<2x1x256xf32>
    %84 = arith.mulf %83, %82 : vector<2x1x256xf32>
    %85 = vector.broadcast %84 : vector<2x1x256xf32> to vector<2x8x256xf32>
    %86 = arith.mulf %73, %85 : vector<2x8x256xf32>
    %87 = vector.extract_strided_slice %17 {offsets = [0, 0, 0], sizes = [2, 8, 128], strides = [1, 1, 1]} : vector<2x16x128xf32> to vector<2x8x128xf32>
    %88 = vector.shape_cast %87 : vector<2x8x128xf32> to vector<16x128xf32>
    %89 = vector.extract_strided_slice %17 {offsets = [0, 8, 0], sizes = [2, 8, 128], strides = [1, 1, 1]} : vector<2x16x128xf32> to vector<2x8x128xf32>
    %90 = vector.shape_cast %89 : vector<2x8x128xf32> to vector<16x128xf32>
    %91 = arith.addf %88, %90 : vector<16x128xf32>
    %cst_40 = arith.constant 5.000000e-01 : f32
    %92 = vector.broadcast %cst_40 : f32 to vector<16x128xf32>
    %93 = arith.mulf %91, %92 : vector<16x128xf32>
    %94 = arith.truncf %93 : vector<16x128xf32> to vector<16x128xbf16>
    %cst_41 = arith.constant dense<0.000000e+00> : vector<16x256xf32>
    %95 = tpu.matmul %94, %8, %cst_41 {dimension_numbers = #tpu.dot_dimension_numbers<[1], [0], [0], [1], [0, 0, 1, 1], [], []>} : vector<16x128xbf16>, vector<128x256xbf16>, vector<16x256xf32> -> vector<16x256xf32>
    %96 = vector.broadcast %13 : vector<1x256xf32> to vector<16x256xf32>
    %97 = arith.addf %95, %96 : vector<16x256xf32>
    %98 = vector.shape_cast %97 : vector<16x256xf32> to vector<2x8x256xf32>
    %99 = arith.addf %86, %98 : vector<2x8x256xf32>
    %100 = arith.truncf %99 : vector<2x8x256xf32> to vector<2x8x256xbf16>
    %c0_42 = arith.constant 0 : index
    %c0_43 = arith.constant 0 : index
    %c0_44 = arith.constant 0 : index
    %101 = vector.load %arg4[%c0_42, %c0_43, %c0_44] : memref<2x8x256xbf16, #tpu.memory_space<vmem>>, vector<2x8x256xbf16>
    tpu.vector_store %arg4[%c0_42, %c0_43, %c0_44], %100 {strides = array<i32>} : memref<2x8x256xbf16, #tpu.memory_space<vmem>>, vector<2x8x256xbf16>,
    return
  }
  func.func @transform_0(%arg0: i32) -> (i32, i32, i32) {
    %c0_i32 = arith.constant 0 : i32
    %c0_i32_0 = arith.constant 0 : i32
    %c0_i32_1 = arith.constant 0 : i32
    return %arg0, %c0_i32, %c0_i32_0 : i32, i32, i32
  }
  func.func @transform_1(%arg0: i32) -> (i32, i32) {
    %c0_i32 = arith.constant 0 : i32
    %c0_i32_0 = arith.constant 0 : i32
    %c0_i32_1 = arith.constant 0 : i32
    return %c0_i32, %c0_i32_0 : i32, i32
  }
  func.func @transform_2(%arg0: i32) -> (i32, i32) {
    %c0_i32 = arith.constant 0 : i32
    %c0_i32_0 = arith.constant 0 : i32
    %c0_i32_1 = arith.constant 0 : i32
    return %c0_i32, %c0_i32_0 : i32, i32
  }
  func.func @transform_3(%arg0: i32) -> (i32, i32, i32) {
    %c0_i32 = arith.constant 0 : i32
    %c0_i32_0 = arith.constant 0 : i32
    %c0_i32_1 = arith.constant 0 : i32
    return %arg0, %c0_i32, %c0_i32_0 : i32, i32, i32
  }
}

</mosaic_0001>

<bundles_post_ra>
// kernel: tpu_custom_call.1
= control target key start
LH: loop header
LB: loop body
LE: loop exit
PB: predicated region body
PF: predicated region fallthrough
CT: control target
= control target key end

     0   :  { %8 = vsyncpa [#allocation3], 0  ;;  %s2532_s0 = inlined_call_operand.hbm [shape: bf16[4,16,128], index: 0, kind: input, shape index: {}]   ;;  %s2533_s1 = inlined_call_operand.hbm [shape: bf16[128,1408], index: 1, kind: input, shape index: {}]   ;;  %s2534_s2 = inlined_call_operand.vmem [shape: f32[1,896], index: 2, kind: input, shape index: {}]   ;;  %s2535_s3 = inlined_call_operand.hbm [shape: bf16[4,8,256], index: 3, kind: output, shape index: {}]  }
   0x1   :  { %10 = vsyncpa [#allocation3 + $0x1], 0 }
   0x2   :  { %11 = vsyncpa [#allocation6], 0 }
   0x3   :  { %12 = vsyncpa [#allocation4], 0 }
   0x4   :  { %14 = vsyncpa [#allocation4 + $0x1], 0  ;;  %s2206_s12 = smov 0   ;;  %s2208_s13 = smov 0  }
   0x5   :  { %s2210_s14 = smov 0   ;;  %s2212_s15 = smov 0  }
   0x6 LB: > { %s2227_s16 = sadd.s32 4294967295, %s2172_s15   ;;  %s1524_s17 = sadd.s32 4294967294, %s2172_s15   ;;  %s2172_s15 = sphi %s2212_s15, %s2555_s15   ;;  %s2168_s14 = sphi %s2210_s14, %s2554_s14   ;;  %s2164_s13 = sphi %s2208_s13, %s2553_s13   ;;  %s2160_s12 = sphi %s2206_s12, %s2552_s12  }
   0x7   : > { %p40_p0 = scmp.ne.s32.totalorder %s2164_s13, %s2160_s12  ;;  %p2536_p1 = scmp.eq.s32.totalorder %s2227_s16, 0 }
   0x8   : > { %p112_p3 = scmp.eq.s32.totalorder %s1524_s17, 1  ;;  %p1525_p5 = scmp.ge.s32.totalorder %s2172_s15, 1 }
   0x9   : > { %p2236_p4 = por %p2536_p1, %p40_p0  ;;  %p119_p7 = scmp.lt.s32.totalorder %s2172_s15, 3 }
   0xa   : > { %p2241_p6 = por %p112_p3, %p40_p0  ;;  %s2174_s21 = smov [#allocation5]  }
   0xb   : > { %s2539_s18 = scalar_select %p2236_p4, 1, 0 }
   0xc   : > { %s2540_s19 = scalar_select %p2241_p6, 1, 0 }
   0xd   : > { %p2246_p8 = pnand %p1525_p5, %p119_p7  ;;  %s131_s22 = sshll.u32 %s2174_s21, 4  ;;  %s2250_s22 = int_to_ptr.vmem [resolvable:$true] %s131_s22 }
   0xe   : > { %s2262_s24 = sadd.s32 1, %s2172_s15   ;;  %s27_s25 = sadd.s32 1, %s2168_s14 }
   0xf   : > { %s2541_s20 = scalar_select %p2246_p8, 1, 0 }
  0x10   : > { %p1866_p9 = pneg %p2246_p8  ;;  %s24_s26 = ssub.s32 %s2172_s15, %s2262_s24 }
  0x11   : > { %s2044_s29 = scalar_lea.hbm %s2533_s1, 11264 }
  0x12   : > { %p2257_p11 = pnand %p1866_p9, %p2536_p1  ;;  %p2045_p12 = scmp.ne.s32.totalorder %s2533_s1, %s2044_s29 }
  0x13   : > { %p2051_p5 = scmp.lt.u32.totalorder %s2044_s29, %s2533_s1 }
  0x14   : > { %p2046_p13 = pneg %p2257_p11 }
  0x16   : > { %p2047_p0 = pnand %p2046_p13, %p2045_p12 }
  0x18   : > { %p2048_p3 = pneg %p2047_p0 }
  0x1a   : > { %p2053_p7 = pnand %p2051_p5, %p2048_p3 }
  0x1c   : > { %2056 = shalt.err (!%p2053_p7)
}
  0x1d   : > { %s2057_s7 = scalar_lea.vmem %s2250_s22, 11264  ;;  %p2065_p2 = scmp.lt.s32.totalorder %s2250_s22, %s2250_s22 }
  0x1e   : > { %p2058_p9 = scmp.ne.s32.totalorder %s2250_s22, %s2057_s7  ;;  %p2066_p6 = scmp.lt.s32.totalorder %s2057_s7, %s2057_s7 }
  0x20   : > { %p2060_p10 = pnand %p2058_p9, %p2046_p13  ;;  %p2067_p4 = por %p2066_p6, %p2065_p2 }
  0x22   : > { %p2061_p1 = pneg %p2060_p10 }
  0x24   : > { %p2068_p8 = pnand %p2067_p4, %p2061_p1 }
  0x26   : > { %2071 = shalt.err (!%p2068_p8)
}
  0x27   : > { %s2175_s8 = smov 704   ;;  %s2176_s9 = smov 44  }
  0x28   : > { %1869 = dma.hbm_to_vmem [thread:$0]  (!%p2257_p11), %s2533_s1, 11264, %s2250_s22, [#allocation6], %s2175_s8, %s2175_s8, %s2176_s9  }
  0x29   : > { %p25_p2 = scmp.eq.s32.totalorder %s24_s26, 0  ;;  %p34_p1 = scmp.ne.s32.totalorder %s2168_s14, %s2164_s13 }
  0x2a   : > { %p35_p4 = scmp.eq.s32.totalorder %s2172_s15, 0  ;;  %p1879_p6 = scmp.lt.s32.totalorder %s2172_s15, 2 }
  0x2b   : > { %s2293_s17 = scalar_select %p25_p2, %s2168_s14, %s27_s25  }
  0x2c   : > { %p36_p8 = por %p35_p4, %p34_p1  ;;  %p2543_p10 = scmp.eq.s32.totalorder %s2227_s16, 1 }
  0x2d   : > { %s148_s27 = sand.u32 1, %s2168_s14   ;;  %s1640_s28 = sshll.u32 %s2172_s15, 8 }
  0x2e   : > { %p2297_p12 = por %p2543_p10, %p34_p1  ;;  %s1528_s29 = sshll.u32 %s148_s27, 4 }
  0x2f   : > { %s2306_s4 = scalar_lea.hbm %s2532_s0, %s1640_s28  ;;  %s152_s22 = scalar_lea.vmem [#allocation2], %s1528_s29 }
  0x30   : > { %s160_s25 = sshll.u32 %s152_s22, 4  ;;  %p2308_p11 = pnand %p1879_p6, %p36_p8  ;;  %s2312_s25 = int_to_ptr.vmem [resolvable:$true] %s160_s25 }
  0x31   : > { %s2314_s5 = scalar_lea.sflag [#allocation3], %s148_s27  ;;  %s2072_s6 = scalar_lea.hbm %s2306_s4, 256 }
  0x32   : > { %p2073_p13 = scmp.ne.s32.totalorder %s2306_s4, %s2072_s6  ;;  %p2074_p0 = pneg %p2308_p11 }
  0x33   : > { %s2077_s9 = scalar_lea.hbm %s2532_s0, 512  ;;  %p2078_p7 = scmp.lt.u32.totalorder %s2306_s4, %s2532_s0 }
  0x34   : > { %p2075_p3 = pnand %p2074_p0, %p2073_p13  ;;  %p2079_p9 = scmp.lt.u32.totalorder %s2077_s9, %s2072_s6 }
  0x35   : > { %p2081_p1 = scmp.lt.u32.totalorder %s2072_s6, %s2306_s4 }
  0x36   : > { %p2076_p5 = pneg %p2075_p3  ;;  %p2080_p2 = por %p2079_p9, %p2078_p7 }
  0x38   : > { %p2082_p4 = por %p2081_p1, %p2080_p2 }
  0x3a   : > { %p2083_p6 = pnand %p2082_p4, %p2076_p5 }
  0x3c   : > { %2086 = shalt.err (!%p2083_p6)
}
  0x3d   : > { %s2087_s27 = scalar_lea.vmem %s2312_s25, 256  ;;  %s2177_s28 = smov [#allocation2]  }
  0x3e   : > { %p2088_p8 = scmp.ne.s32.totalorder %s2312_s25, %s2087_s27  ;;  %s2092_s29 = sshll.u32 %s2177_s28, 4  ;;  %s2093_s29 = int_to_ptr.vmem [resolvable:$false] %s2092_s29 }
  0x3f   : > { %s2094_s23 = scalar_lea.vmem %s2093_s29, 512  ;;  %p2095_p3 = scmp.lt.s32.totalorder %s2312_s25, %s2093_s29 }
  0x40   : > { %p2090_p10 = pnand %p2088_p8, %p2074_p0  ;;  %p2096_p7 = scmp.lt.s32.totalorder %s2094_s23, %s2087_s27 }
  0x42   : > { %p2091_p13 = pneg %p2090_p10  ;;  %p2097_p9 = por %p2096_p7, %p2095_p3 }
  0x44   : > { %p2098_p2 = pnand %p2097_p9, %p2091_p13 }
  0x46   : > { %2101 = shalt.err (!%p2098_p2)
}
  0x47   : > { %s2178_s30 = smov 64   ;;  %s2179_s22 = smov 4  }
  0x48   : > { %1873 = dma.hbm_to_vmem [thread:$0]  (!%p2308_p11), %s2306_s4, 256, %s2312_s25, %s2314_s5, %s2178_s30, %s2178_s30, %s2179_s22  }
  0x49   : > { %p2546_p0 = scmp.ne.s32.totalorder %s2541_s20, 0 }
  0x4a   : > { %s2345_s6 = sand.u32 (!%p2546_p0), 1, %s2164_s13   ;;  %p2547_p5 = scmp.ne.s32.totalorder (!%p2546_p0), %s2539_s18, 0 }
  0x4b   : > { %172 = sbr.rel (%p2546_p0) target bundleno = 1131 (0x46b), region = 32  ;;  %s1533_s7 = sshll.u32 (!%p2546_p0), %s2345_s6, 4 }
  0x4c   : > { %s175_s8 = scalar_lea.sflag (!%p2546_p0), [#allocation3], %s2345_s6  ;;  %s178_s9 = scalar_lea.vmem (!%p2546_p0), [#allocation2], %s1533_s7 }
  0x52   : > { %2147 = dma.done.wait (%p2547_p5), %s175_s8, 256  }
  0x53   : > { %2149 = vsyncadd (%p2547_p5), %s175_s8, 4294967040  ;;  %p2548_p11 = scmp.eq.s32.totalorder %s2227_s16, 0 }
  0x55   : > { %2151 = dma.done.wait (%p2548_p11), [#allocation6], 11264   ;;  %p2549_p1 = pmov %p2548_p11 }
  0x56   : > { %v2180_v0 = vmov 0.0   ;;  %v1924_v1 = vld [vmem:[#allocation5] ss:$44 sps:$4 sm:$0xff]   ;;  %v1925_v2 = vld [vmem:[#allocation5 + $0x58] ss:$44 sps:$4 sm:$0xff]   ;;  %vm2181_vm0 = vmmov 0  }
  0x57   : > { %2153 = vsyncadd (%p2549_p1), [#allocation6], 4294956032  ;;  %1738 = vmatprep.subr.bf16.mxu1 %v2180_v0  ;;  %1718 = vmatprep.subr.bf16.mxu0 %v1924_v1  ;;  %v1926_v3 = vld [vmem:[#allocation5 + $0xb0] ss:$44 sps:$4 sm:$0xff]   ;;  %v1927_v4 = vld [vmem:[#allocation5 + $0x108] ss:$44 sps:$4 sm:$0xff]  }
  0x58   : > { %1719 = vmatpush3.bf16.msra.mxu0 %v1924_v1  ;;  %v1646_v5 = vld [vmem:[%s178_s9] sm:$0xff]   ;;  %v1653_v6 = vld [vmem:[%s178_s9 + $0x8] sm:$0xff]   ;;  %1754 = vmatprep.mubr.msk.bf16.mxu1 %vm2181_vm0, %v2180_v0  ;;  %vm574_vm1 = vcmask 1040384   ;;  %vm1054_vm2 = vcmask 1046528   ;;  %s204_s29 = scalar_lea.vmem [#allocation7], %s1533_s7  ;;  %s1644_s30 = sshll.u32 %s2227_s16, 8 }
  0x59   : > { %1720 = vmatprep.subr.bf16.mxu0 %v1925_v2  ;;  %v1647_v7 = vunpack.c.l.bf16 %v1646_v5  ;;  %v1648_v8 = vunpack.c.h.bf16 %v1646_v5  ;;  %v1651_v9 = vunpack.c.l.bf16 %v1653_v6  ;;  %v1652_v10 = vunpack.c.h.bf16 %v1653_v6  ;;  %v1933_v11 = vld [vmem:[#allocation5 + $0x4] ss:$44 sps:$4 sm:$0xff]   ;;  %v1928_v16 = vld [vmem:[#allocation5 + $0x160] ss:$44 sps:$4 sm:$0xff]   ;;  %v1935_v20 = vld [vmem:[#allocation5 + $0x5c] ss:$44 sps:$4 sm:$0xff]   ;;  %s2488_s8 = scalar_lea.hbm %s2535_s3, %s1644_s30 }
  0x5a   : > { %1739 = vmatpush3.bf16.msra.mxu1 %v1933_v11  ;;  %v1929_v21 = vld [vmem:[#allocation5 + $0x1b8] ss:$44 sps:$4 sm:$0xff]   ;;  %v1937_v22 = vld [vmem:[#allocation5 + $0xb4] ss:$44 sps:$4 sm:$0xff]   ;;  %v1930_v23 = vld [vmem:[#allocation5 + $0x210] ss:$44 sps:$4 sm:$0xff]  }
  0x5b   : > { %v365_v12 = vmax.f32 %v1647_v7, 0.0  ;;  %v366_v13 = vmax.f32 %v1648_v8, 0.0  ;;  %v367_v14 = vmax.f32 %v1651_v9, 0.0  ;;  %v368_v15 = vmax.f32 %v1652_v10, 0.0  ;;  %1740 = vmatprep.subr.bf16.mxu1 %v2180_v0  ;;  %v1939_v24 = vld [vmem:[#allocation5 + $0x10c] ss:$44 sps:$4 sm:$0xff]  }
  0x5c   : > { %1721 = vmatpush3.bf16.msra.mxu0 %v1925_v2  ;;  %v1931_v25 = vld [vmem:[#allocation5 + $0x268] ss:$44 sps:$4 sm:$0xff]   ;;  %v1941_v26 = vld [vmem:[#allocation5 + $0x164] ss:$44 sps:$4 sm:$0xff]   ;;  %v1934_v30 = vld [vmem:[#allocation5 + $0x60] ss:$44 sps:$4 sm:$0xff]  }
  0x5d   : > { %1722 = vmatprep.subr.bf16.mxu0 %v1926_v3  ;;  %v369_v17 = vpack.c.bf16 %v366_v13, %v365_v12  ;;  %v2360_v18 = vadd.f32 %v366_v13, %v365_v12  ;;  %v2362_v19 = vadd.f32 %v368_v15, %v367_v14  ;;  %v1943_v27 = vld [vmem:[#allocation5 + $0x1bc] ss:$44 sps:$4 sm:$0xff]   ;;  %v370_v29 = vpack.c.bf16 %v368_v15, %v367_v14  ;;  %v1936_v31 = vld [vmem:[#allocation5 + $0xb8] ss:$44 sps:$4 sm:$0xff]   ;;  %v1942_v34 = vld [vmem:[#allocation5 + $0x1c0] ss:$44 sps:$4 sm:$0xff]  }
  0x5e   : > { %1741 = vmatpush3.bf16.msra.mxu1 %v1935_v20  ;;  %v1932_v28 = vld [vmem:[#allocation5 + $0x8] ss:$44 sps:$4 sm:$0xff]   ;;  %v1938_v32 = vld [vmem:[#allocation5 + $0x110] ss:$44 sps:$4 sm:$0xff]   ;;  %v1944_v35 = vld [vmem:[#allocation5 + $0x218] ss:$44 sps:$4 sm:$0xff]  }
  0x5f   : > { %1734 = vmatprep.mubr.bf16.mxu0 %v369_v17  ;;  %1742 = vmatprep.subr.bf16.mxu1 %v2180_v0  ;;  %v1940_v33 = vld [vmem:[#allocation5 + $0x168] ss:$44 sps:$4 sm:$0xff]   ;;  %v1946_v37 = vld [vmem:[#allocation5 + $0x270] ss:$44 sps:$4 sm:$0xff]   ;;  %v1947_v38 = vld [vmem:[#allocation5 + $0x26c] ss:$44 sps:$4 sm:$0xff]  }
  0x60   : > { %1723 = vmatpush3.bf16.msra.mxu0 %v1926_v3  ;;  %v1945_v36 = vld [vmem:[#allocation5 + $0x214] ss:$44 sps:$4 sm:$0xff]   ;;  %v1948_v53 = vld [vmem:[#allocation5 + $0xc] ss:$44 sps:$4 sm:$0xff]   ;;  %v1949_v55 = vld [vmem:[#allocation5 + $0x64] ss:$44 sps:$4 sm:$0xff]  }
  0x61   : > { %1724 = vmatprep.subr.bf16.mxu0 %v1927_v4  ;;  %v1536_v39 = vld [vmem:[%s2534_s2] ss:$0 sm:$0xff]  ;;  %v1950_v56 = vld [vmem:[#allocation5 + $0xbc] ss:$44 sps:$4 sm:$0xff]   ;;  %v1952_v58 = vld [vmem:[#allocation5 + $0x16c] ss:$44 sps:$4 sm:$0xff]  }
  0x62   : > { %1743 = vmatpush3.bf16.msra.mxu1 %v1937_v22  ;;  %v1951_v57 = vld [vmem:[#allocation5 + $0x114] ss:$44 sps:$4 sm:$0xff]   ;;  %v1953_v59 = vld [vmem:[#allocation5 + $0x1c4] ss:$44 sps:$4 sm:$0xff]   ;;  %v1954_v60 = vld [vmem:[#allocation5 + $0x21c] ss:$44 sps:$4 sm:$0xff]  }
  0x63   : > { %1744 = vmatprep.subr.bf16.mxu1 %v2180_v0  ;;  %v1955_v61 = vld [vmem:[#allocation5 + $0x274] ss:$44 sps:$4 sm:$0xff]   ;;  %v1956_v62 = vld [vmem:[#allocation5 + $0x10] ss:$44 sps:$4 sm:$0xff]   ;;  %v1959_v2 = vld [vmem:[#allocation5 + $0x6c] ss:$44 sps:$4 sm:$0xff]  }
  0x64   : > { %1725 = vmatpush3.bf16.msra.mxu0 %v1927_v4  ;;  %v1957_v63 = vld [vmem:[#allocation5 + $0x14] ss:$44 sps:$4 sm:$0xff]   ;;  %v1961_v4 = vld [vmem:[#allocation5 + $0xc4] ss:$44 sps:$4 sm:$0xff]   ;;  %v1963_v6 = vld [vmem:[#allocation5 + $0x11c] ss:$44 sps:$4 sm:$0xff]  }
  0x65   : > { %1726 = vmatprep.subr.bf16.mxu0 %v1928_v16  ;;  %v1958_v1 = vld [vmem:[#allocation5 + $0x68] ss:$44 sps:$4 sm:$0xff]   ;;  %v1960_v3 = vld [vmem:[#allocation5 + $0xc0] ss:$44 sps:$4 sm:$0xff]   ;;  %v1962_v5 = vld [vmem:[#allocation5 + $0x118] ss:$44 sps:$4 sm:$0xff]  }
  0x66   : > { %1745 = vmatpush3.bf16.msra.mxu1 %v1939_v24  ;;  %v1964_v7 = vld [vmem:[#allocation5 + $0x170] ss:$44 sps:$4 sm:$0xff]   ;;  %v1965_v8 = vld [vmem:[#allocation5 + $0x174] ss:$44 sps:$4 sm:$0xff]   ;;  %v1967_v10 = vld [vmem:[#allocation5 + $0x1cc] ss:$44 sps:$4 sm:$0xff]  }
  0x67   : > { %1746 = vmatprep.subr.bf16.mxu1 %v2180_v0  ;;  %v1966_v9 = vld [vmem:[#allocation5 + $0x1c8] ss:$44 sps:$4 sm:$0xff]   ;;  %v1968_v11 = vld [vmem:[#allocation5 + $0x220] ss:$44 sps:$4 sm:$0xff]   ;;  %v1969_v12 = vld [vmem:[#allocation5 + $0x224] ss:$44 sps:$4 sm:$0xff]  }
  0x68   : > { %1727 = vmatpush3.bf16.msra.mxu0 %v1928_v16  ;;  %v1970_v13 = vld [vmem:[#allocation5 + $0x278] ss:$44 sps:$4 sm:$0xff]   ;;  %v1971_v14 = vld [vmem:[#allocation5 + $0x27c] ss:$44 sps:$4 sm:$0xff]   ;;  %s1441_s23 = sshll.u32 %s204_s29, 4  ;;  %s1427_s9 = scalar_lea.sflag [#allocation4], %s2345_s6  ;;  %s2483_s23 = int_to_ptr.vmem [resolvable:$true] %s1441_s23 }
  0x69   : > { %1728 = vmatprep.subr.bf16.mxu0 %v1929_v21  ;;  %s2102_s18 = scalar_lea.vmem %s2483_s23, 256  ;;  %s2183_s16 = smov [#allocation7]  }
  0x6a   : > { %1747 = vmatpush3.bf16.msra.mxu1 %v1941_v26  ;;  %p2103_p4 = scmp.ne.s32.totalorder %s2483_s23, %s2102_s18  ;;  %s2106_s20 = sshll.u32 %s2183_s16, 4  ;;  %s2107_s20 = int_to_ptr.vmem [resolvable:$false] %s2106_s20 }
  0x6b   : > { %1748 = vmatprep.subr.bf16.mxu1 %v2180_v0  ;;  %s2108_s4 = scalar_lea.vmem %s2107_s20, 512  ;;  %p2109_p10 = scmp.lt.s32.totalorder %s2483_s23, %s2107_s20 }
  0x6c   : > { %1729 = vmatpush3.bf16.msra.mxu0 %v1929_v21  ;;  %p2104_p6 = pnand %p2103_p4, %p2297_p12  ;;  %p2110_p13 = scmp.lt.s32.totalorder %s2108_s4, %s2102_s18 }
  0x6d   : > { %1730 = vmatprep.subr.bf16.mxu0 %v1930_v23 }
  0x6e   : > { %1749 = vmatpush3.bf16.msra.mxu1 %v1943_v27  ;;  %p2105_p8 = pneg %p2104_p6  ;;  %p2111_p3 = por %p2110_p13, %p2109_p10 }
  0x6f   : > { %1750 = vmatprep.subr.bf16.mxu1 %v2180_v0 }
  0x70   : > { %1731 = vmatpush3.bf16.msra.mxu0 %v1930_v23  ;;  %p2112_p7 = pnand %p2111_p3, %p2105_p8 }
  0x71   : > { %1732 = vmatprep.subr.bf16.mxu0 %v1931_v25 }
  0x72   : > { %1751 = vmatpush3.bf16.msra.mxu1 %v1945_v36 }
  0x73   : > { %1752 = vmatprep.subr.bf16.mxu1 %v2180_v0 }
  0x74   : > { %1733 = vmatpush3.bf16.msra.mxu0 %v1931_v25 }
  0x75   : > { %1758 = vmatprep.subr.bf16.mxu0 %v2180_v0 }
  0x76   : > { %1753 = vmatpush3.bf16.msra.mxu1 %v1947_v38 }
  0x77   : > { %1735 = vmatmul.mubr.bf16.vlgmr.msra.gmra.mrb[0].mxu0 %v370_v29  ;;  %1778 = vmatprep.subr.bf16.mxu1 %v2180_v0 }
  0x78   : > { %1759 = vmatpush3.bf16.msra.mxu0 %v1932_v28  ;;  %1774 = vmatprep.mubr.msk.bf16.mxu0 %vm2181_vm0, %v2180_v0 }
  0x79   : > { %1760 = vmatprep.subr.bf16.mxu0 %v2180_v0 }
  0x7c   : > { %1761 = vmatpush3.bf16.msra.mxu0 %v1934_v30 }
  0x7d   : > { %1762 = vmatprep.subr.bf16.mxu0 %v2180_v0 }
  0x80   : > { %1763 = vmatpush3.bf16.msra.mxu0 %v1936_v31  ;;  %v1569_v31 = vld [vmem:[%s2534_s2 + $0x1] ss:$0 sm:$0xff] }
  0x81   : > { %1764 = vmatprep.subr.bf16.mxu0 %v2180_v0 }
  0x84   : > { %1765 = vmatpush3.bf16.msra.mxu0 %v1938_v32 }
  0x85   : > { %1766 = vmatprep.subr.bf16.mxu0 %v2180_v0 }
  0x88   : > { %1767 = vmatpush3.bf16.msra.mxu0 %v1940_v33 }
  0x89   : > { %1768 = vmatprep.subr.bf16.mxu0 %v2180_v0 }
  0x8c   : > { %1769 = vmatpush3.bf16.msra.mxu0 %v1942_v34 }
  0x8d   : > { %1770 = vmatprep.subr.bf16.mxu0 %v2180_v0 }
  0x90   : > { %1771 = vmatpush3.bf16.msra.mxu0 %v1944_v35 }
  0x91   : > { %1772 = vmatprep.subr.bf16.mxu0 %v2180_v0 }
  0x94   : > { %1773 = vmatpush3.bf16.msra.mxu0 %v1946_v37 }
  0x95   : > { %1798 = vmatprep.subr.bf16.mxu0 %v2180_v0 }
 0x14a   : > { %v1736_v40 = vpop.f32.mrb[0].mxu0 }
 0x14b   : > { %v468_v41 = vadd.f32 %v1736_v40, %v1536_v39  ;;  %v459_v42 = vpop.f32.mrb[1].mxu0 }
 0x14c   : > { %v460_v43 = vadd.f32 %v1536_v39, %v459_v42  ;;  %v1737_v44 = vpop.f32.mrb[2].mxu0  ;;  %v1972_v42 = vld [vmem:[#allocation5 + $0x18] ss:$44 sps:$4 sm:$0xff]  }
 0x14d   : > { %v476_v45 = vmax.f32 %v468_v41, 0.0  ;;  %v471_v46 = vadd.f32 %v1737_v44, %v1536_v39  ;;  %v462_v47 = vpop.f32.mrb[3].mxu0  ;;  %v1973_v44 = vld [vmem:[#allocation5 + $0x70] ss:$44 sps:$4 sm:$0xff]  }
 0x14e   : > { %v474_v48 = vmax.f32 %v460_v43, 0.0  ;;  %v463_v49 = vadd.f32 %v1536_v39, %v462_v47  ;;  %v1976_v47 = vld [vmem:[#allocation5 + $0x178] ss:$44 sps:$4 sm:$0xff]  }
 0x14f   : > { %v477_v50 = vmax.f32 %v471_v46, 0.0  ;;  %v1975_v46 = vld [vmem:[#allocation5 + $0x120] ss:$44 sps:$4 sm:$0xff]  }
 0x150   : > { %v577_v51 = vpack.c.bf16 %v476_v45, %v474_v48  ;;  %v475_v52 = vmax.f32 %v463_v49, 0.0  ;;  %v1974_v45 = vld [vmem:[#allocation5 + $0xc8] ss:$44 sps:$4 sm:$0xff]   ;;  %v1977_v48 = vld [vmem:[#allocation5 + $0x1d0] ss:$44 sps:$4 sm:$0xff]  }
 0x151   : > { %v1978_v49 = vld [vmem:[#allocation5 + $0x228] ss:$44 sps:$4 sm:$0xff]  }
 0x152   : > { %v478_v54 = vpack.c.bf16 %v477_v50, %v475_v52  ;;  %1775 = vmatmul.mubr.bf16.vlgmr.msra.gmra.mrb[4].mxu0 %v577_v51  ;;  %v1979_v50 = vld [vmem:[#allocation5 + $0x280] ss:$44 sps:$4 sm:$0xff]   ;;  %v1980_v51 = vld [vmem:[#allocation5 + $0x1c] ss:$44 sps:$4 sm:$0xff]  }
 0x153   : > { %1814 = vmatprep.mubr.msk.bf16.mxu0 %vm2181_vm0, %v2180_v0  ;;  %1799 = vmatpush3.bf16.msra.mxu0 %v1956_v62  ;;  %v1982_v52 = vld [vmem:[#allocation5 + $0x20] ss:$44 sps:$4 sm:$0xff]   ;;  %v2000_v62 = vld [vmem:[#allocation5 + $0x230] ss:$44 sps:$4 sm:$0xff]  }
 0x154   : > { %1755 = vmatmul.mubr.bf16.vlgmr.msra.gmra.mrb[0].mxu1 %v478_v54  ;;  %1800 = vmatprep.subr.bf16.mxu0 %v2180_v0 }
 0x155   : > { %1779 = vmatpush3.bf16.msra.mxu1 %v1948_v53  ;;  %1794 = vmatprep.mubr.msk.bf16.mxu1 %vm2181_vm0, %v2180_v0  ;;  %v1985_v53 = vld [vmem:[#allocation5 + $0x78] ss:$44 sps:$4 sm:$0xff]  }
 0x156   : > { %1780 = vmatprep.subr.bf16.mxu1 %v2180_v0 }
 0x157   : > { %1801 = vmatpush3.bf16.msra.mxu0 %v1958_v1  ;;  %v2003_v1 = vld [vmem:[#allocation5 + $0x288] ss:$44 sps:$4 sm:$0xff]  }
 0x158   : > { %1802 = vmatprep.subr.bf16.mxu0 %v2180_v0 }
 0x159   : > { %1781 = vmatpush3.bf16.msra.mxu1 %v1949_v55  ;;  %v1988_v55 = vld [vmem:[#allocation5 + $0xd0] ss:$44 sps:$4 sm:$0xff]  }
 0x15a   : > { %1782 = vmatprep.subr.bf16.mxu1 %v2180_v0 }
 0x15b   : > { %1803 = vmatpush3.bf16.msra.mxu0 %v1960_v3  ;;  %v1267_v3 = vmul.f32 0.5, %v2360_v18  ;;  %v2015_v18 = vld [vmem:[#allocation5 + $0x130] ss:$44 sps:$4 sm:$0xff]  }
 0x15c   : > { %1804 = vmatprep.subr.bf16.mxu0 %v2180_v0 }
 0x15d   : > { %1783 = vmatpush3.bf16.msra.mxu1 %v1950_v56  ;;  %v1986_v56 = vld [vmem:[#allocation5 + $0xcc] ss:$44 sps:$4 sm:$0xff]  }
 0x15e   : > { %1784 = vmatprep.subr.bf16.mxu1 %v2180_v0 }
 0x15f   : > { %1805 = vmatpush3.bf16.msra.mxu0 %v1962_v5  ;;  %v2182_v5 = vmov 0  }
 0x160   : > { %1806 = vmatprep.subr.bf16.mxu0 %v2180_v0 }
 0x161   : > { %1785 = vmatpush3.bf16.msra.mxu1 %v1951_v57  ;;  %v1991_v57 = vld [vmem:[#allocation5 + $0x128] ss:$44 sps:$4 sm:$0xff]  }
 0x162   : > { %1786 = vmatprep.subr.bf16.mxu1 %v2180_v0 }
 0x163   : > { %1807 = vmatpush3.bf16.msra.mxu0 %v1964_v7  ;;  %v2006_v7 = vld [vmem:[#allocation5 + $0x28] ss:$44 sps:$4 sm:$0xff]  }
 0x164   : > { %1808 = vmatprep.subr.bf16.mxu0 %v2180_v0 }
 0x165   : > { %1787 = vmatpush3.bf16.msra.mxu1 %v1952_v58  ;;  %v1989_v58 = vld [vmem:[#allocation5 + $0x124] ss:$44 sps:$4 sm:$0xff]  }
 0x166   : > { %1788 = vmatprep.subr.bf16.mxu1 %v2180_v0 }
 0x167   : > { %1809 = vmatpush3.bf16.msra.mxu0 %v1966_v9  ;;  %v2009_v9 = vld [vmem:[#allocation5 + $0x80] ss:$44 sps:$4 sm:$0xff]  }
 0x168   : > { %1810 = vmatprep.subr.bf16.mxu0 %v2180_v0 }
 0x169   : > { %1789 = vmatpush3.bf16.msra.mxu1 %v1953_v59  ;;  %v1994_v59 = vld [vmem:[#allocation5 + $0x180] ss:$44 sps:$4 sm:$0xff]  }
 0x16a   : > { %1790 = vmatprep.subr.bf16.mxu1 %v2180_v0 }
 0x16b   : > { %1811 = vmatpush3.bf16.msra.mxu0 %v1968_v11  ;;  %v2012_v11 = vld [vmem:[#allocation5 + $0xd8] ss:$44 sps:$4 sm:$0xff]  }
 0x16c   : > { %1812 = vmatprep.subr.bf16.mxu0 %v2180_v0 }
 0x16d   : > { %1791 = vmatpush3.bf16.msra.mxu1 %v1954_v60  ;;  %v1997_v60 = vld [vmem:[#allocation5 + $0x1d8] ss:$44 sps:$4 sm:$0xff]  }
 0x16e   : > { %1792 = vmatprep.subr.bf16.mxu1 %v2180_v0 }
 0x16f   : > { %1813 = vmatpush3.bf16.msra.mxu0 %v1970_v13  ;;  %v2018_v13 = vld [vmem:[#allocation5 + $0x188] ss:$44 sps:$4 sm:$0xff]  }
 0x170   : > { %1838 = vmatprep.subr.bf16.mxu0 %v2180_v0 }
 0x171   : > { %1793 = vmatpush3.bf16.msra.mxu1 %v1955_v61  ;;  %v1995_v61 = vld [vmem:[#allocation5 + $0x1d4] ss:$44 sps:$4 sm:$0xff]  }
 0x172   : > { %1818 = vmatprep.subr.bf16.mxu1 %v2180_v0 }
 0x174   : > { %1795 = vmatmul.mubr.bf16.vlgmr.msra.gmra.mrb[4].mxu1 %v478_v54  ;;  %v1983_v54 = vld [vmem:[#allocation5 + $0x74] ss:$44 sps:$4 sm:$0xff]  }
 0x175   : > { %1834 = vmatprep.mubr.msk.bf16.mxu1 %vm2181_vm0, %v2180_v0  ;;  %1819 = vmatpush3.bf16.msra.mxu1 %v1957_v63  ;;  %v1998_v63 = vld [vmem:[#allocation5 + $0x22c] ss:$44 sps:$4 sm:$0xff]  }
 0x176   : > { %1820 = vmatprep.subr.bf16.mxu1 %v2180_v0 }
 0x179   : > { %1821 = vmatpush3.bf16.msra.mxu1 %v1959_v2  ;;  %v2001_v2 = vld [vmem:[#allocation5 + $0x284] ss:$44 sps:$4 sm:$0xff]  }
 0x17a   : > { %1822 = vmatprep.subr.bf16.mxu1 %v2180_v0 }
 0x17d   : > { %1823 = vmatpush3.bf16.msra.mxu1 %v1961_v4  ;;  %v1268_v4 = vmul.f32 0.5, %v2362_v19  ;;  %v2013_v19 = vld [vmem:[#allocation5 + $0x12c] ss:$44 sps:$4 sm:$0xff]  }
 0x17e   : > { %1824 = vmatprep.subr.bf16.mxu1 %v2180_v0 }
 0x181   : > { %1825 = vmatpush3.bf16.msra.mxu1 %v1963_v6  ;;  %v2004_v6 = vld [vmem:[#allocation5 + $0x24] ss:$44 sps:$4 sm:$0xff]  }
 0x182   : > { %1826 = vmatprep.subr.bf16.mxu1 %v2180_v0 }
 0x185   : > { %1827 = vmatpush3.bf16.msra.mxu1 %v1965_v8  ;;  %v1269_v8 = vpack.c.bf16 %v1268_v4, %v1267_v3 }
 0x186   : > { %1828 = vmatprep.subr.bf16.mxu1 %v2180_v0 }
 0x189   : > { %1829 = vmatpush3.bf16.msra.mxu1 %v1967_v10  ;;  %v2007_v10 = vld [vmem:[#allocation5 + $0x7c] ss:$44 sps:$4 sm:$0xff]  }
 0x18a   : > { %1830 = vmatprep.subr.bf16.mxu1 %v2180_v0 }
 0x18d   : > { %1831 = vmatpush3.bf16.msra.mxu1 %v1969_v12  ;;  %v2010_v12 = vld [vmem:[#allocation5 + $0xd4] ss:$44 sps:$4 sm:$0xff]  }
 0x18e   : > { %1832 = vmatprep.subr.bf16.mxu1 %v2180_v0 }
 0x191   : > { %1833 = vmatpush3.bf16.msra.mxu1 %v1971_v14  ;;  %v2016_v14 = vld [vmem:[#allocation5 + $0x184] ss:$44 sps:$4 sm:$0xff]  }
 0x192   : > { %1161 = vmatprep.subr.bf16.mxu1 %v1982_v52 }
 0x225   : > { %v660_v15 = vpop.f32.mrb[4].mxu0 }
 0x226   : > { %v1776_v16 = vpop.f32.mrb[5].mxu0 }
 0x227   : > { %v561_v17 = vpop.f32.mrb[0].mxu1  ;;  %v663_v20 = vpop.f32.mrb[6].mxu0  ;;  %v2019_v16 = vld [vmem:[#allocation5 + $0x1dc] ss:$44 sps:$4 sm:$0xff]  }
 0x228   : > { %v570_v21 = vrot.slane %v561_v17, 7  ;;  %v1756_v22 = vpop.f32.mrb[1].mxu1  ;;  %v1777_v23 = vpop.f32.mrb[7].mxu0  ;;  %v2024_v17 = vld [vmem:[#allocation5 + $0x238] ss:$44 sps:$4 sm:$0xff]  }
 0x229   : > { %v564_v24 = vpop.f32.mrb[2].mxu1  ;;  %v2025_v22 = vld [vmem:[#allocation5 + $0x28c] ss:$44 sps:$4 sm:$0xff]  }
 0x22a   : > { %v575_v25 = vsel %vm574_vm1, 0.0, %v570_v21  ;;  %v571_v26 = vrot.slane %v564_v24, 7  ;;  %v1757_v27 = vpop.f32.mrb[3].mxu1  ;;  %v2027_v21 = vld [vmem:[#allocation5 + $0x290] ss:$44 sps:$4 sm:$0xff]  }
 0x22b   : > { %v667_v28 = vadd.f32 %v660_v15, %v575_v25  ;;  %v2021_v15 = vld [vmem:[#allocation5 + $0x1e0] ss:$44 sps:$4 sm:$0xff]  }
 0x22c   : > { %v576_v29 = vsel %vm574_vm1, 0.0, %v571_v26 }
 0x22d   : > { %v668_v30 = vadd.f32 %v663_v20, %v576_v29  ;;  %v2022_v20 = vld [vmem:[#allocation5 + $0x234] ss:$44 sps:$4 sm:$0xff]  }
 0x247   : > { %v751_v32 = vpop.f32.mrb[4].mxu1 }
 0x248   : > { %v758_v33 = vadd.f32 %v751_v32, %v667_v28  ;;  %v1796_v34 = vpop.f32.mrb[5].mxu1 }
 0x249   : > { %v754_v35 = vpop.f32.mrb[6].mxu1 }
 0x24a   : > { %v766_v36 = vadd.f32 %v1569_v31, %v758_v33  ;;  %v759_v37 = vadd.f32 %v754_v35, %v668_v30  ;;  %v1797_v38 = vpop.f32.mrb[7].mxu1 }
 0x24c   : > { %v767_v39 = vadd.f32 %v1569_v31, %v759_v37  ;;  %v768_v40 = vmax.f32 %v766_v36, 0.0 }
 0x24e   : > { %v769_v41 = vmax.f32 %v767_v39, 0.0 }
 0x250   : > { %v770_v43 = vpack.c.bf16 %v769_v41, %v768_v40  ;;  %v1594_v41 = vld [vmem:[%s2534_s2 + $0x2] ss:$0 sm:$0xff] }
 0x252   : > { %1815 = vmatmul.mubr.bf16.vlgmr.msra.gmra.mrb[8].mxu0 %v770_v43  ;;  %1835 = vmatmul.mubr.bf16.vlgmr.msra.gmra.mrb[8].mxu1 %v770_v43 }
 0x253   : > { %1839 = vmatpush3.bf16.msra.mxu0 %v1972_v42  ;;  %1854 = vmatprep.mubr.msk.bf16.mxu0 %vm2181_vm0, %v2180_v0 }
 0x254   : > { %1840 = vmatprep.subr.bf16.mxu0 %v2180_v0  ;;  %1162 = vmatpush1.bf16.msra.mxu1 %v1980_v51 }
 0x255   : > { %1163 = vmatprep.subr.bf16.mxu1 %v1985_v53  ;;  %1193 = vmatprep.mubr.bf16.mxu1 %v2182_v5 }
 0x257   : > { %1841 = vmatpush3.bf16.msra.mxu0 %v1973_v44 }
 0x258   : > { %1842 = vmatprep.subr.bf16.mxu0 %v2180_v0  ;;  %1164 = vmatpush1.bf16.msra.mxu1 %v1983_v54 }
 0x259   : > { %1165 = vmatprep.subr.bf16.mxu1 %v1988_v55 }
 0x25b   : > { %1843 = vmatpush3.bf16.msra.mxu0 %v1974_v45 }
 0x25c   : > { %1844 = vmatprep.subr.bf16.mxu0 %v2180_v0  ;;  %1166 = vmatpush1.bf16.msra.mxu1 %v1986_v56 }
 0x25d   : > { %1167 = vmatprep.subr.bf16.mxu1 %v1991_v57  ;;  %v1071_v57 = vlaneseq }
 0x25f   : > { %1845 = vmatpush3.bf16.msra.mxu0 %v1975_v46 }
 0x260   : > { %1846 = vmatprep.subr.bf16.mxu0 %v2180_v0  ;;  %1168 = vmatpush1.bf16.msra.mxu1 %v1989_v58  ;;  %v2446_v58 = vshrl.u32 %v1071_v57, 7 }
 0x261   : > { %1169 = vmatprep.subr.bf16.mxu1 %v1994_v59 }
 0x262   : > { %v1073_v59 = vsub.s32 0, %v2446_v58 }
 0x263   : > { %1847 = vmatpush3.bf16.msra.mxu0 %v1976_v47 }
 0x264   : > { %1848 = vmatprep.subr.bf16.mxu0 %v2180_v0 }
 0x267   : > { %1849 = vmatpush3.bf16.msra.mxu0 %v1977_v48 }
 0x268   : > { %1850 = vmatprep.subr.bf16.mxu0 %v2180_v0 }
 0x26b   : > { %1851 = vmatpush3.bf16.msra.mxu0 %v1978_v49 }
 0x26c   : > { %1852 = vmatprep.subr.bf16.mxu0 %v2180_v0  ;;  %v1992_v0 = vld [vmem:[#allocation5 + $0x17c] ss:$44 sps:$4 sm:$0xff]  }
 0x26d   : > { %1170 = vmatpush1.bf16.msra.mxu1 %v1992_v0  ;;  %v355_v0 = vld [vmem:[%s2534_s2 + $0x3] sm:$0x3] }
 0x26e   : > { %1171 = vmatprep.subr.bf16.mxu1 %v1997_v60  ;;  %v1077_v60 = vsub.s32 1, %v2446_v58 }
 0x26f   : > { %1853 = vmatpush3.bf16.msra.mxu0 %v1979_v50 }
 0x270   : > { %1361 = vmatprep.subr.bf16.mxu0 %v2006_v7 }
 0x271   : > { %1172 = vmatpush1.bf16.msra.mxu1 %v1995_v61  ;;  %v1074_v61 = vrot.slane %v355_v0, %v1073_v59 }
 0x272   : > { %1855 = vmatmul.mubr.bf16.vlgmr.msra.gmra.mrb[12].mxu0 %v770_v43  ;;  %1173 = vmatprep.subr.bf16.mxu1 %v2000_v62  ;;  %v1078_v62 = vrot.slane %v355_v0, %v1077_v60 }
 0x273   : > { %1393 = vmatprep.mubr.bf16.mxu0 %v2182_v5  ;;  %1362 = vmatpush1.bf16.msra.mxu0 %v2004_v6 }
 0x274   : > { %1363 = vmatprep.subr.bf16.mxu0 %v2009_v9 }
 0x275   : > { %1174 = vmatpush1.bf16.msra.mxu1 %v1998_v63 }
 0x276   : > { %1175 = vmatprep.subr.bf16.mxu1 %v2003_v1 }
 0x277   : > { %1364 = vmatpush1.bf16.msra.mxu0 %v2007_v10 }
 0x278   : > { %1365 = vmatprep.subr.bf16.mxu0 %v2012_v11 }
 0x279   : > { %1176 = vmatpush1.bf16.msra.mxu1 %v2001_v2 }
 0x27b   : > { %1366 = vmatpush1.bf16.msra.mxu0 %v2010_v12 }
 0x27c   : > { %1367 = vmatprep.subr.bf16.mxu0 %v2015_v18 }
 0x27f   : > { %1368 = vmatpush1.bf16.msra.mxu0 %v2013_v19 }
 0x280   : > { %1369 = vmatprep.subr.bf16.mxu0 %v2018_v13 }
 0x283   : > { %1370 = vmatpush1.bf16.msra.mxu0 %v2016_v14 }
 0x284   : > { %1371 = vmatprep.subr.bf16.mxu0 %v2021_v15 }
 0x287   : > { %1372 = vmatpush1.bf16.msra.mxu0 %v2019_v16 }
 0x288   : > { %1373 = vmatprep.subr.bf16.mxu0 %v2024_v17 }
 0x28b   : > { %1374 = vmatpush1.bf16.msra.mxu0 %v2022_v20 }
 0x28c   : > { %1375 = vmatprep.subr.bf16.mxu0 %v2027_v21 }
 0x28f   : > { %1376 = vmatpush1.bf16.msra.mxu0 %v2025_v22 }
 0x292   : > { %1394 = vmatmul.mubr.bf16.vlgmr.msra.gmra.mrb[16].mxu0 %v1269_v8 }
 0x325   : > { %v853_v23 = vpop.f32.mrb[8].mxu0  ;;  %v950_v24 = vpop.f32.mrb[8].mxu1 }
 0x326   : > { %v862_v25 = vrot.slane %v853_v23, 7  ;;  %v1816_v26 = vpop.f32.mrb[9].mxu0  ;;  %v1836_v27 = vpop.f32.mrb[9].mxu1 }
 0x327   : > { %v856_v28 = vpop.f32.mrb[10].mxu0  ;;  %v953_v29 = vpop.f32.mrb[10].mxu1 }
 0x328   : > { %v866_v30 = vsel %vm574_vm1, 0.0, %v862_v25  ;;  %v863_v31 = vrot.slane %v856_v28, 7  ;;  %v1817_v32 = vpop.f32.mrb[11].mxu0  ;;  %v1837_v33 = vpop.f32.mrb[11].mxu1 }
 0x329   : > { %v957_v34 = vadd.f32 %v950_v24, %v866_v30 }
 0x32a   : > { %v867_v35 = vsel %vm574_vm1, 0.0, %v863_v31 }
 0x32b   : > { %v958_v36 = vadd.f32 %v953_v29, %v867_v35 }
 0x345   : > { %v1041_v37 = vpop.f32.mrb[12].mxu0 }
 0x346   : > { %v1050_v38 = vrot.slane %v1041_v37, 1  ;;  %v1856_v39 = vpop.f32.mrb[13].mxu0 }
 0x347   : > { %v1044_v40 = vpop.f32.mrb[14].mxu0 }
 0x348   : > { %v1055_v42 = vsel %vm1054_vm2, %v1050_v38, 0.0  ;;  %v1051_v43 = vrot.slane %v1044_v40, 1  ;;  %v1857_v44 = vpop.f32.mrb[15].mxu0 }
 0x349   : > { %v1057_v45 = vadd.f32 %v1055_v42, %v957_v34 }
 0x34a   : > { %v1056_v46 = vsel %vm1054_vm2, %v1051_v43, 0.0 }
 0x34b   : > { %v1065_v47 = vadd.f32 %v1594_v41, %v1057_v45  ;;  %v1058_v48 = vadd.f32 %v1056_v46, %v958_v36 }
 0x34d   : > { %v1066_v49 = vadd.f32 %v1594_v41, %v1058_v48  ;;  %v1067_v50 = vmax.f32 %v1065_v47, 0.0  ;;  %v356_v48 = vld [vmem:[%s2534_s2 + $0x5] sm:$0x3] }
 0x34f   : > { %v1068_v51 = vmax.f32 %v1066_v49, 0.0  ;;  %v1274_v49 = vrot.slane %v356_v48, %v1073_v59 }
 0x351   : > { %v1069_v52 = vpack.c.bf16 %v1068_v51, %v1067_v50  ;;  %v1278_v50 = vrot.slane %v356_v48, %v1077_v60 }
 0x353   : > { %1194 = vmatmul.mubr.bf16.vlgmr.msra.gmra.mrb[12].mxu1 %v1069_v52 }
 0x365   : > { %v2438_v53 = vpop.f32.mrb[16].mxu0 }
 0x366   : > { %v2440_v54 = vpop.f32.mrb[17].mxu0  ;;  %v1396_v58 = vadd.f32 %v2438_v53, %v1274_v49 }
 0x367   : > { %v2442_v55 = vpop.f32.mrb[18].mxu0 }
 0x368   : > { %v2444_v56 = vpop.f32.mrb[19].mxu0  ;;  %v1400_v53 = vadd.f32 %v2442_v55, %v1274_v49 }
 0x426   : > { %v1195_v63 = vpop.f32.mrb[12].mxu1 }
 0x427   : > { %v2453_v1 = vadd.f32 %v1195_v63, %v1074_v61  ;;  %v1197_v2 = vpop.f32.mrb[13].mxu1 }
 0x428   : > { %v2455_v3 = vadd.f32 %v1197_v2, %v1078_v62  ;;  %v1199_v4 = vpop.f32.mrb[14].mxu1 }
 0x429   : > { %v1204_v5 = vrot.slane %v2453_v1, 4  ;;  %v2458_v6 = vadd.f32 %v1199_v4, %v1074_v61  ;;  %v1201_v7 = vpop.f32.mrb[15].mxu1 }
 0x42a   : > { %v1210_v8 = vrot.slane %v2455_v3, 4  ;;  %v2461_v9 = vadd.f32 %v1201_v7, %v1078_v62  ;;  %v1398_v62 = vadd.f32 %v2440_v54, %v1278_v50 }
 0x42b   : > { %v1205_v10 = vadd.f32 %v1204_v5, %v2453_v1  ;;  %v1216_v11 = vrot.slane %v2458_v6, 4 }
 0x42c   : > { %v1211_v12 = vadd.f32 %v1210_v8, %v2455_v3  ;;  %v1222_v18 = vrot.slane %v2461_v9, 4 }
 0x42d   : > { %v1206_v19 = vrot.slane %v1205_v10, 2  ;;  %v1217_v13 = vadd.f32 %v1216_v11, %v2458_v6 }
 0x42e   : > { %v1212_v14 = vrot.slane %v1211_v12, 2  ;;  %v1223_v15 = vadd.f32 %v1222_v18, %v2461_v9 }
 0x42f   : > { %v1207_v16 = vadd.f32 %v1206_v19, %v1205_v10  ;;  %v1218_v17 = vrot.slane %v1217_v13, 2  ;;  %v1402_v10 = vadd.f32 %v2444_v56, %v1278_v50 }
 0x430   : > { %v1213_v20 = vadd.f32 %v1212_v14, %v1211_v12  ;;  %v1224_v21 = vrot.slane %v1223_v15, 2 }
 0x431   : > { %v1208_v22 = vrot.slane %v1207_v16, 1  ;;  %v1219_v23 = vadd.f32 %v1218_v17, %v1217_v13 }
 0x432   : > { %v1214_v24 = vrot.slane %v1213_v20, 1  ;;  %v1225_v25 = vadd.f32 %v1224_v21, %v1223_v15 }
 0x433   : > { %v1209_v26 = vadd.f32 %v1208_v22, %v1207_v16  ;;  %v1220_v27 = vrot.slane %v1219_v23, 1 }
 0x434   : > { %v1215_v28 = vadd.f32 %v1214_v24, %v1213_v20  ;;  %v1226_v29 = vrot.slane %v1225_v25, 1 }
 0x435   : > { %v1611_v30 = vmul.f32 -0.125, %v1209_v26  ;;  %v1221_v31 = vadd.f32 %v1220_v27, %v1219_v23 }
 0x436   : > { %v1612_v32 = vmul.f32 -0.125, %v1215_v28  ;;  %v1227_v33 = vadd.f32 %v1226_v29, %v1225_v25 }
 0x437   : > { %v1237_v34 = vmul.f32 1.442695, %v1611_v30  ;;  %v1613_v35 = vmul.f32 -0.125, %v1221_v31 }
 0x438   : > { %v1239_v36 = vmul.f32 1.442695, %v1612_v32  ;;  %v1614_v37 = vmul.f32 -0.125, %v1227_v33 }
 0x439   : > { %2028 = vpow2.f32 %v1237_v34  ;;  %v1241_v38 = vmul.f32 1.442695, %v1613_v35 }
 0x43a   : > { %2030 = vpow2.f32 %v1239_v36  ;;  %v1243_v39 = vmul.f32 1.442695, %v1614_v37 }
 0x43b   : > { %2032 = vpow2.f32 %v1241_v38 }
 0x43c   : > { %2034 = vpow2.f32 %v1243_v39 }
 0x443   : > { %v2029_v40 = vpop.eup %2028 }
 0x444   : > { %v2031_v41 = vpop.eup %2030  ;;  %v1245_v42 = vadd.f32 1.0, %v2029_v40 }
 0x445   : > { %v2033_v43 = vpop.eup %2032  ;;  %v1246_v44 = vadd.f32 1.0, %v2031_v41 }
 0x446   : > { %v2035_v45 = vpop.eup %2034  ;;  %2036 = vrcp.f32 %v1245_v42  ;;  %v1247_v46 = vadd.f32 1.0, %v2033_v43 }
 0x447   : > { %2038 = vrcp.f32 %v1246_v44  ;;  %v1248_v47 = vadd.f32 1.0, %v2035_v45 }
 0x448   : > { %2040 = vrcp.f32 %v1247_v46 }
 0x449   : > { %2042 = vrcp.f32 %v1248_v47 }
 0x450   : > { %v2037_v51 = vpop.eup %2036 }
 0x451   : > { %v2039_v52 = vpop.eup %2038  ;;  %v1257_v57 = vmul.f32 0.2, %v2037_v51 }
 0x452   : > { %v2041_v0 = vpop.eup %2040  ;;  %v1258_v61 = vmul.f32 0.2, %v2039_v52 }
 0x453   : > { %v2043_v63 = vpop.eup %2042  ;;  %v1261_v2 = vmul.f32 %v1257_v57, %v2453_v1  ;;  %v1259_v4 = vmul.f32 0.2, %v2041_v0 }
 0x454   : > { %v1262_v5 = vmul.f32 %v1258_v61, %v2455_v3  ;;  %v1260_v7 = vmul.f32 0.2, %v2043_v63 }
 0x455   : > { %v1404_v8 = vadd.f32 %v1396_v58, %v1261_v2  ;;  %v1263_v59 = vmul.f32 %v1259_v4, %v2458_v6 }
 0x456   : > { %v1405_v60 = vadd.f32 %v1398_v62, %v1262_v5  ;;  %v1264_v54 = vmul.f32 %v1260_v7, %v2461_v9 }
 0x457   : > { %v1406_v1 = vadd.f32 %v1400_v53, %v1263_v59 }
 0x458   : > { %v1641_v11 = vpack.c.bf16 %v1405_v60, %v1404_v8  ;;  %v1407_v3 = vadd.f32 %v1402_v10, %v1264_v54 }
 0x45a   : > { %1424 = vst [vmem:[%s204_s29] sm:$0xff] %v1641_v11  ;;  %v1642_v55 = vpack.c.bf16 %v1407_v3, %v1406_v1 }
 0x45c   : > { %1425 = vst [vmem:[%s204_s29 + $0x8] sm:$0xff] %v1642_v55 }
 0x45d   : > { %2115 = shalt.err (!%p2112_p7)
}
 0x45e   : > { %s2116_s25 = scalar_lea.hbm %s2488_s8, 256  ;;  %s2120_s10 = scalar_lea.hbm %s2535_s3, 512 }
 0x45f   : > { %p2117_p9 = scmp.ne.s32.totalorder %s2488_s8, %s2116_s25  ;;  %p2121_p5 = scmp.lt.u32.totalorder %s2488_s8, %s2535_s3 }
 0x460   : > { %p2122_p11 = scmp.lt.u32.totalorder %s2120_s10, %s2116_s25  ;;  %p2124_p4 = scmp.lt.u32.totalorder %s2116_s25, %s2488_s8 }
 0x461   : > { %p2118_p2 = pnand %p2117_p9, %p2297_p12 }
 0x462   : > { %p2123_p1 = por %p2122_p11, %p2121_p5 }
 0x463   : > { %p2119_p0 = pneg %p2118_p2 }
 0x464   : > { %p2125_p6 = por %p2124_p4, %p2123_p1 }
 0x466   : > { %p2126_p8 = pnand %p2125_p6, %p2119_p0 }
 0x468   : > { %2129 = shalt.err (!%p2126_p8)
}
 0x469   : > { %s2184_s28 = smov 128   ;;  %s2185_s29 = smov 8  }
 0x46a   : > { %1864 = dma.vmem_to_hbm [thread:$0]  (%p2297_p12), %s2483_s23, 256, %s2488_s8, %s1427_s9, %s2184_s28, %s2184_s28, %s2185_s29  }
 0x46b PF: > { %s1456_s30 = sand.u32 1, %s2160_s12   ;;  %p2550_p10 = scmp.ne.s32.totalorder %s2540_s19, 0 }
 0x46c   : > { %p2551_p13 = scmp.ge.s32.totalorder %s2172_s15, 2  ;;  %s1457_s22 = scalar_lea.sflag [#allocation4], %s1456_s30 }
 0x46e   : > { %p1875_p3 = pnand %p2551_p13, %p2550_p10 }
 0x470   : > { %2155 = dma.done.wait (!%p1875_p3), %s1457_s22, 256  }
 0x471   : > { %2157 = vsyncadd (!%p1875_p3), %s1457_s22, 4294967040  ;;  %p17_p7 = scmp.ge.s32.totalorder %s2262_s24, 4   ;;  %s2552_s12 = smov %s2164_s13 }
 0x472   : > { %s2553_s13 = smov %s2168_s14  ;;  %s2554_s14 = smov %s2293_s17 }
 0x473   : > { %s2555_s15 = smov %s2262_s24  ;;  %19 = sbr.rel (!%p17_p7) target bundleno = 6 (0x6), region = 81 }
 0x47a   :  { %1462 = vsyncpa [#allocation3], 1 }
 0x47b   :  { %1464 = vsyncpa [#allocation3 + $0x1], 1 }
 0x47c   :  { %1465 = vsyncpa [#allocation6], 1 }
 0x47d   :  { %1466 = vsyncpa [#allocation4], 1 }
 0x47e   :  { %1468 = vsyncpa [#allocation4 + $0x1], 1 }

// kernel: tpu_custom_call.1
= control target key start
LH: loop header
LB: loop body
LE: loop exit
PB: predicated region body
PF: predicated region fallthrough
CT: control target
= control target key end

     0   :  { %8 = vsyncpa [#allocation3], 0  ;;  %s2532_s0 = inlined_call_operand.hbm [shape: bf16[4,16,128], index: 0, kind: input, shape index: {}]   ;;  %s2533_s1 = inlined_call_operand.hbm [shape: bf16[128,1408], index: 1, kind: input, shape index: {}]   ;;  %s2534_s2 = inlined_call_operand.vmem [shape: f32[1,896], index: 2, kind: input, shape index: {}]   ;;  %s2535_s3 = inlined_call_operand.hbm [shape: bf16[4,8,256], index: 3, kind: output, shape index: {}]  }
   0x1   :  { %10 = vsyncpa [#allocation3 + $0x1], 0 }
   0x2   :  { %11 = vsyncpa [#allocation6], 0 }
   0x3   :  { %12 = vsyncpa [#allocation4], 0 }
   0x4   :  { %14 = vsyncpa [#allocation4 + $0x1], 0  ;;  %s2206_s12 = smov 0   ;;  %s2208_s13 = smov 0  }
   0x5   :  { %s2210_s14 = smov 0   ;;  %s2212_s15 = smov 0  }
   0x6 LB: > { %s2227_s16 = sadd.s32 4294967295, %s2172_s15   ;;  %s1524_s17 = sadd.s32 4294967294, %s2172_s15   ;;  %s2172_s15 = sphi %s2212_s15, %s2555_s15   ;;  %s2168_s14 = sphi %s2210_s14, %s2554_s14   ;;  %s2164_s13 = sphi %s2208_s13, %s2553_s13   ;;  %s2160_s12 = sphi %s2206_s12, %s2552_s12  }
   0x7   : > { %p40_p0 = scmp.ne.s32.totalorder %s2164_s13, %s2160_s12  ;;  %p2536_p1 = scmp.eq.s32.totalorder %s2227_s16, 0 }
   0x8   : > { %p112_p3 = scmp.eq.s32.totalorder %s1524_s17, 1  ;;  %p1525_p5 = scmp.ge.s32.totalorder %s2172_s15, 1 }
   0x9   : > { %p2236_p4 = por %p2536_p1, %p40_p0  ;;  %p119_p7 = scmp.lt.s32.totalorder %s2172_s15, 3 }
   0xa   : > { %p2241_p6 = por %p112_p3, %p40_p0  ;;  %s2174_s21 = smov [#allocation5]  }
   0xb   : > { %s2539_s18 = scalar_select %p2236_p4, 1, 0 }
   0xc   : > { %s2540_s19 = scalar_select %p2241_p6, 1, 0 }
   0xd   : > { %p2246_p8 = pnand %p1525_p5, %p119_p7  ;;  %s131_s22 = sshll.u32 %s2174_s21, 4  ;;  %s2250_s22 = int_to_ptr.vmem [resolvable:$true] %s131_s22 }
   0xe   : > { %s2262_s24 = sadd.s32 1, %s2172_s15   ;;  %s27_s25 = sadd.s32 1, %s2168_s14 }
   0xf   : > { %s2541_s20 = scalar_select %p2246_p8, 1, 0 }
  0x10   : > { %p1866_p9 = pneg %p2246_p8  ;;  %s24_s26 = ssub.s32 %s2172_s15, %s2262_s24 }
  0x11   : > { %s2044_s29 = scalar_lea.hbm %s2533_s1, 11264 }
  0x12   : > { %p2257_p11 = pnand %p1866_p9, %p2536_p1  ;;  %p2045_p12 = scmp.ne.s32.totalorder %s2533_s1, %s2044_s29 }
  0x13   : > { %p2051_p5 = scmp.lt.u32.totalorder %s2044_s29, %s2533_s1 }
  0x14   : > { %p2046_p13 = pneg %p2257_p11 }
  0x16   : > { %p2047_p0 = pnand %p2046_p13, %p2045_p12 }
  0x18   : > { %p2048_p3 = pneg %p2047_p0 }
  0x1a   : > { %p2053_p7 = pnand %p2051_p5, %p2048_p3 }
  0x1c   : > { %2056 = shalt.err (!%p2053_p7)
}
  0x1d   : > { %s2057_s7 = scalar_lea.vmem %s2250_s22, 11264  ;;  %p2065_p2 = scmp.lt.s32.totalorder %s2250_s22, %s2250_s22 }
  0x1e   : > { %p2058_p9 = scmp.ne.s32.totalorder %s2250_s22, %s2057_s7  ;;  %p2066_p6 = scmp.lt.s32.totalorder %s2057_s7, %s2057_s7 }
  0x20   : > { %p2060_p10 = pnand %p2058_p9, %p2046_p13  ;;  %p2067_p4 = por %p2066_p6, %p2065_p2 }
  0x22   : > { %p2061_p1 = pneg %p2060_p10 }
  0x24   : > { %p2068_p8 = pnand %p2067_p4, %p2061_p1 }
  0x26   : > { %2071 = shalt.err (!%p2068_p8)
}
  0x27   : > { %s2175_s8 = smov 704   ;;  %s2176_s9 = smov 44  }
  0x28   : > { %1869 = dma.hbm_to_vmem [thread:$0]  (!%p2257_p11), %s2533_s1, 11264, %s2250_s22, [#allocation6], %s2175_s8, %s2175_s8, %s2176_s9  }
  0x29   : > { %p25_p2 = scmp.eq.s32.totalorder %s24_s26, 0  ;;  %p34_p1 = scmp.ne.s32.totalorder %s2168_s14, %s2164_s13 }
  0x2a   : > { %p35_p4 = scmp.eq.s32.totalorder %s2172_s15, 0  ;;  %p1879_p6 = scmp.lt.s32.totalorder %s2172_s15, 2 }
  0x2b   : > { %s2293_s17 = scalar_select %p25_p2, %s2168_s14, %s27_s25  }
  0x2c   : > { %p36_p8 = por %p35_p4, %p34_p1  ;;  %p2543_p10 = scmp.eq.s32.totalorder %s2227_s16, 1 }
  0x2d   : > { %s148_s27 = sand.u32 1, %s2168_s14   ;;  %s1640_s28 = sshll.u32 %s2172_s15, 8 }
  0x2e   : > { %p2297_p12 = por %p2543_p10, %p34_p1  ;;  %s1528_s29 = sshll.u32 %s148_s27, 4 }
  0x2f   : > { %s2306_s4 = scalar_lea.hbm %s2532_s0, %s1640_s28  ;;  %s152_s22 = scalar_lea.vmem [#allocation2], %s1528_s29 }
  0x30   : > { %s160_s25 = sshll.u32 %s152_s22, 4  ;;  %p2308_p11 = pnand %p1879_p6, %p36_p8  ;;  %s2312_s25 = int_to_ptr.vmem [resolvable:$true] %s160_s25 }
  0x31   : > { %s2314_s5 = scalar_lea.sflag [#allocation3], %s148_s27  ;;  %s2072_s6 = scalar_lea.hbm %s2306_s4, 256 }
  0x32   : > { %p2073_p13 = scmp.ne.s32.totalorder %s2306_s4, %s2072_s6  ;;  %p2074_p0 = pneg %p2308_p11 }
  0x33   : > { %s2077_s9 = scalar_lea.hbm %s2532_s0, 512  ;;  %p2078_p7 = scmp.lt.u32.totalorder %s2306_s4, %s2532_s0 }
  0x34   : > { %p2075_p3 = pnand %p2074_p0, %p2073_p13  ;;  %p2079_p9 = scmp.lt.u32.totalorder %s2077_s9, %s2072_s6 }
  0x35   : > { %p2081_p1 = scmp.lt.u32.totalorder %s2072_s6, %s2306_s4 }
  0x36   : > { %p2076_p5 = pneg %p2075_p3  ;;  %p2080_p2 = por %p2079_p9, %p2078_p7 }
  0x38   : > { %p2082_p4 = por %p2081_p1, %p2080_p2 }
  0x3a   : > { %p2083_p6 = pnand %p2082_p4, %p2076_p5 }
  0x3c   : > { %2086 = shalt.err (!%p2083_p6)
}
  0x3d   : > { %s2087_s27 = scalar_lea.vmem %s2312_s25, 256  ;;  %s2177_s28 = smov [#allocation2]  }
  0x3e   : > { %p2088_p8 = scmp.ne.s32.totalorder %s2312_s25, %s2087_s27  ;;  %s2092_s29 = sshll.u32 %s2177_s28, 4  ;;  %s2093_s29 = int_to_ptr.vmem [resolvable:$false] %s2092_s29 }
  0x3f   : > { %s2094_s23 = scalar_lea.vmem %s2093_s29, 512  ;;  %p2095_p3 = scmp.lt.s32.totalorder %s2312_s25, %s2093_s29 }
  0x40   : > { %p2090_p10 = pnand %p2088_p8, %p2074_p0  ;;  %p2096_p7 = scmp.lt.s32.totalorder %s2094_s23, %s2087_s27 }
  0x42   : > { %p2091_p13 = pneg %p2090_p10  ;;  %p2097_p9 = por %p2096_p7, %p2095_p3 }
  0x44   : > { %p2098_p2 = pnand %p2097_p9, %p2091_p13 }
  0x46   : > { %2101 = shalt.err (!%p2098_p2)
}
  0x47   : > { %s2178_s30 = smov 64   ;;  %s2179_s22 = smov 4  }
  0x48   : > { %1873 = dma.hbm_to_vmem [thread:$0]  (!%p2308_p11), %s2306_s4, 256, %s2312_s25, %s2314_s5, %s2178_s30, %s2178_s30, %s2179_s22  }
  0x49   : > { %p2546_p0 = scmp.ne.s32.totalorder %s2541_s20, 0 }
  0x4a   : > { %s2345_s6 = sand.u32 (!%p2546_p0), 1, %s2164_s13   ;;  %p2547_p5 = scmp.ne.s32.totalorder (!%p2546_p0), %s2539_s18, 0 }
  0x4b   : > { %172 = sbr.rel (%p2546_p0) target bundleno = 1131 (0x46b), region = 32  ;;  %s1533_s7 = sshll.u32 (!%p2546_p0), %s2345_s6, 4 }
  0x4c   : > { %s175_s8 = scalar_lea.sflag (!%p2546_p0), [#allocation3], %s2345_s6  ;;  %s178_s9 = scalar_lea.vmem (!%p2546_p0), [#allocation2], %s1533_s7 }
  0x52   : > { %2147 = dma.done.wait (%p2547_p5), %s175_s8, 256  }
  0x53   : > { %2149 = vsyncadd (%p2547_p5), %s175_s8, 4294967040  ;;  %p2548_p11 = scmp.eq.s32.totalorder %s2227_s16, 0 }
  0x55   : > { %2151 = dma.done.wait (%p2548_p11), [#allocation6], 11264   ;;  %p2549_p1 = pmov %p2548_p11 }
  0x56   : > { %v2180_v0 = vmov 0.0   ;;  %v1924_v1 = vld [vmem:[#allocation5] ss:$44 sps:$4 sm:$0xff]   ;;  %v1925_v2 = vld [vmem:[#allocation5 + $0x58] ss:$44 sps:$4 sm:$0xff]   ;;  %vm2181_vm0 = vmmov 0  }
  0x57   : > { %2153 = vsyncadd (%p2549_p1), [#allocation6], 4294956032  ;;  %1738 = vmatprep.subr.bf16.mxu1 %v2180_v0  ;;  %1718 = vmatprep.subr.bf16.mxu0 %v1924_v1  ;;  %v1926_v3 = vld [vmem:[#allocation5 + $0xb0] ss:$44 sps:$4 sm:$0xff]   ;;  %v1927_v4 = vld [vmem:[#allocation5 + $0x108] ss:$44 sps:$4 sm:$0xff]  }
  0x58   : > { %1719 = vmatpush3.bf16.msra.mxu0 %v1924_v1  ;;  %v1646_v5 = vld [vmem:[%s178_s9] sm:$0xff]   ;;  %v1653_v6 = vld [vmem:[%s178_s9 + $0x8] sm:$0xff]   ;;  %1754 = vmatprep.mubr.msk.bf16.mxu1 %vm2181_vm0, %v2180_v0  ;;  %vm574_vm1 = vcmask 1040384   ;;  %vm1054_vm2 = vcmask 1046528   ;;  %s204_s29 = scalar_lea.vmem [#allocation7], %s1533_s7  ;;  %s1644_s30 = sshll.u32 %s2227_s16, 8 }
  0x59   : > { %1720 = vmatprep.subr.bf16.mxu0 %v1925_v2  ;;  %v1647_v7 = vunpack.c.l.bf16 %v1646_v5  ;;  %v1648_v8 = vunpack.c.h.bf16 %v1646_v5  ;;  %v1651_v9 = vunpack.c.l.bf16 %v1653_v6  ;;  %v1652_v10 = vunpack.c.h.bf16 %v1653_v6  ;;  %v1933_v11 = vld [vmem:[#allocation5 + $0x4] ss:$44 sps:$4 sm:$0xff]   ;;  %v1928_v16 = vld [vmem:[#allocation5 + $0x160] ss:$44 sps:$4 sm:$0xff]   ;;  %v1935_v20 = vld [vmem:[#allocation5 + $0x5c] ss:$44 sps:$4 sm:$0xff]   ;;  %s2488_s8 = scalar_lea.hbm %s2535_s3, %s1644_s30 }
  0x5a   : > { %1739 = vmatpush3.bf16.msra.mxu1 %v1933_v11  ;;  %v1929_v21 = vld [vmem:[#allocation5 + $0x1b8] ss:$44 sps:$4 sm:$0xff]   ;;  %v1937_v22 = vld [vmem:[#allocation5 + $0xb4] ss:$44 sps:$4 sm:$0xff]   ;;  %v1930_v23 = vld [vmem:[#allocation5 + $0x210] ss:$44 sps:$4 sm:$0xff]  }
  0x5b   : > { %v365_v12 = vmax.f32 %v1647_v7, 0.0  ;;  %v366_v13 = vmax.f32 %v1648_v8, 0.0  ;;  %v367_v14 = vmax.f32 %v1651_v9, 0.0  ;;  %v368_v15 = vmax.f32 %v1652_v10, 0.0  ;;  %1740 = vmatprep.subr.bf16.mxu1 %v2180_v0  ;;  %v1939_v24 = vld [vmem:[#allocation5 + $0x10c] ss:$44 sps:$4 sm:$0xff]  }
  0x5c   : > { %1721 = vmatpush3.bf16.msra.mxu0 %v1925_v2  ;;  %v1931_v25 = vld [vmem:[#allocation5 + $0x268] ss:$44 sps:$4 sm:$0xff]   ;;  %v1941_v26 = vld [vmem:[#allocation5 + $0x164] ss:$44 sps:$4 sm:$0xff]   ;;  %v1934_v30 = vld [vmem:[#allocation5 + $0x60] ss:$44 sps:$4 sm:$0xff]  }
  0x5d   : > { %1722 = vmatprep.subr.bf16.mxu0 %v1926_v3  ;;  %v369_v17 = vpack.c.bf16 %v366_v13, %v365_v12  ;;  %v2360_v18 = vadd.f32 %v366_v13, %v365_v12  ;;  %v2362_v19 = vadd.f32 %v368_v15, %v367_v14  ;;  %v1943_v27 = vld [vmem:[#allocation5 + $0x1bc] ss:$44 sps:$4 sm:$0xff]   ;;  %v370_v29 = vpack.c.bf16 %v368_v15, %v367_v14  ;;  %v1936_v31 = vld [vmem:[#allocation5 + $0xb8] ss:$44 sps:$4 sm:$0xff]   ;;  %v1942_v34 = vld [vmem:[#allocation5 + $0x1c0] ss:$44 sps:$4 sm:$0xff]  }
  0x5e   : > { %1741 = vmatpush3.bf16.msra.mxu1 %v1935_v20  ;;  %v1932_v28 = vld [vmem:[#allocation5 + $0x8] ss:$44 sps:$4 sm:$0xff]   ;;  %v1938_v32 = vld [vmem:[#allocation5 + $0x110] ss:$44 sps:$4 sm:$0xff]   ;;  %v1944_v35 = vld [vmem:[#allocation5 + $0x218] ss:$44 sps:$4 sm:$0xff]  }
  0x5f   : > { %1734 = vmatprep.mubr.bf16.mxu0 %v369_v17  ;;  %1742 = vmatprep.subr.bf16.mxu1 %v2180_v0  ;;  %v1940_v33 = vld [vmem:[#allocation5 + $0x168] ss:$44 sps:$4 sm:$0xff]   ;;  %v1946_v37 = vld [vmem:[#allocation5 + $0x270] ss:$44 sps:$4 sm:$0xff]   ;;  %v1947_v38 = vld [vmem:[#allocation5 + $0x26c] ss:$44 sps:$4 sm:$0xff]  }
  0x60   : > { %1723 = vmatpush3.bf16.msra.mxu0 %v1926_v3  ;;  %v1945_v36 = vld [vmem:[#allocation5 + $0x214] ss:$44 sps:$4 sm:$0xff]   ;;  %v1948_v53 = vld [vmem:[#allocation5 + $0xc] ss:$44 sps:$4 sm:$0xff]   ;;  %v1949_v55 = vld [vmem:[#allocation5 + $0x64] ss:$44 sps:$4 sm:$0xff]  }
  0x61   : > { %1724 = vmatprep.subr.bf16.mxu0 %v1927_v4  ;;  %v1536_v39 = vld [vmem:[%s2534_s2] ss:$0 sm:$0xff]  ;;  %v1950_v56 = vld [vmem:[#allocation5 + $0xbc] ss:$44 sps:$4 sm:$0xff]   ;;  %v1952_v58 = vld [vmem:[#allocation5 + $0x16c] ss:$44 sps:$4 sm:$0xff]  }
  0x62   : > { %1743 = vmatpush3.bf16.msra.mxu1 %v1937_v22  ;;  %v1951_v57 = vld [vmem:[#allocation5 + $0x114] ss:$44 sps:$4 sm:$0xff]   ;;  %v1953_v59 = vld [vmem:[#allocation5 + $0x1c4] ss:$44 sps:$4 sm:$0xff]   ;;  %v1954_v60 = vld [vmem:[#allocation5 + $0x21c] ss:$44 sps:$4 sm:$0xff]  }
  0x63   : > { %1744 = vmatprep.subr.bf16.mxu1 %v2180_v0  ;;  %v1955_v61 = vld [vmem:[#allocation5 + $0x274] ss:$44 sps:$4 sm:$0xff]   ;;  %v1956_v62 = vld [vmem:[#allocation5 + $0x10] ss:$44 sps:$4 sm:$0xff]   ;;  %v1959_v2 = vld [vmem:[#allocation5 + $0x6c] ss:$44 sps:$4 sm:$0xff]  }
  0x64   : > { %1725 = vmatpush3.bf16.msra.mxu0 %v1927_v4  ;;  %v1957_v63 = vld [vmem:[#allocation5 + $0x14] ss:$44 sps:$4 sm:$0xff]   ;;  %v1961_v4 = vld [vmem:[#allocation5 + $0xc4] ss:$44 sps:$4 sm:$0xff]   ;;  %v1963_v6 = vld [vmem:[#allocation5 + $0x11c] ss:$44 sps:$4 sm:$0xff]  }
  0x65   : > { %1726 = vmatprep.subr.bf16.mxu0 %v1928_v16  ;;  %v1958_v1 = vld [vmem:[#allocation5 + $0x68] ss:$44 sps:$4 sm:$0xff]   ;;  %v1960_v3 = vld [vmem:[#allocation5 + $0xc0] ss:$44 sps:$4 sm:$0xff]   ;;  %v1962_v5 = vld [vmem:[#allocation5 + $0x118] ss:$44 sps:$4 sm:$0xff]  }
  0x66   : > { %1745 = vmatpush3.bf16.msra.mxu1 %v1939_v24  ;;  %v1964_v7 = vld [vmem:[#allocation5 + $0x170] ss:$44 sps:$4 sm:$0xff]   ;;  %v1965_v8 = vld [vmem:[#allocation5 + $0x174] ss:$44 sps:$4 sm:$0xff]   ;;  %v1967_v10 = vld [vmem:[#allocation5 + $0x1cc] ss:$44 sps:$4 sm:$0xff]  }
  0x67   : > { %1746 = vmatprep.subr.bf16.mxu1 %v2180_v0  ;;  %v1966_v9 = vld [vmem:[#allocation5 + $0x1c8] ss:$44 sps:$4 sm:$0xff]   ;;  %v1968_v11 = vld [vmem:[#allocation5 + $0x220] ss:$44 sps:$4 sm:$0xff]   ;;  %v1969_v12 = vld [vmem:[#allocation5 + $0x224] ss:$44 sps:$4 sm:$0xff]  }
  0x68   : > { %1727 = vmatpush3.bf16.msra.mxu0 %v1928_v16  ;;  %v1970_v13 = vld [vmem:[#allocation5 + $0x278] ss:$44 sps:$4 sm:$0xff]   ;;  %v1971_v14 = vld [vmem:[#allocation5 + $0x27c] ss:$44 sps:$4 sm:$0xff]   ;;  %s1441_s23 = sshll.u32 %s204_s29, 4  ;;  %s1427_s9 = scalar_lea.sflag [#allocation4], %s2345_s6  ;;  %s2483_s23 = int_to_ptr.vmem [resolvable:$true] %s1441_s23 }
  0x69   : > { %1728 = vmatprep.subr.bf16.mxu0 %v1929_v21  ;;  %s2102_s18 = scalar_lea.vmem %s2483_s23, 256  ;;  %s2183_s16 = smov [#allocation7]  }
  0x6a   : > { %1747 = vmatpush3.bf16.msra.mxu1 %v1941_v26  ;;  %p2103_p4 = scmp.ne.s32.totalorder %s2483_s23, %s2102_s18  ;;  %s2106_s20 = sshll.u32 %s2183_s16, 4  ;;  %s2107_s20 = int_to_ptr.vmem [resolvable:$false] %s2106_s20 }
  0x6b   : > { %1748 = vmatprep.subr.bf16.mxu1 %v2180_v0  ;;  %s2108_s4 = scalar_lea.vmem %s2107_s20, 512  ;;  %p2109_p10 = scmp.lt.s32.totalorder %s2483_s23, %s2107_s20 }
  0x6c   : > { %1729 = vmatpush3.bf16.msra.mxu0 %v1929_v21  ;;  %p2104_p6 = pnand %p2103_p4, %p2297_p12  ;;  %p2110_p13 = scmp.lt.s32.totalorder %s2108_s4, %s2102_s18 }
  0x6d   : > { %1730 = vmatprep.subr.bf16.mxu0 %v1930_v23 }
  0x6e   : > { %1749 = vmatpush3.bf16.msra.mxu1 %v1943_v27  ;;  %p2105_p8 = pneg %p2104_p6  ;;  %p2111_p3 = por %p2110_p13, %p2109_p10 }
  0x6f   : > { %1750 = vmatprep.subr.bf16.mxu1 %v2180_v0 }
  0x70   : > { %1731 = vmatpush3.bf16.msra.mxu0 %v1930_v23  ;;  %p2112_p7 = pnand %p2111_p3, %p2105_p8 }
  0x71   : > { %1732 = vmatprep.subr.bf16.mxu0 %v1931_v25 }
  0x72   : > { %1751 = vmatpush3.bf16.msra.mxu1 %v1945_v36 }
  0x73   : > { %1752 = vmatprep.subr.bf16.mxu1 %v2180_v0 }
  0x74   : > { %1733 = vmatpush3.bf16.msra.mxu0 %v1931_v25 }
  0x75   : > { %1758 = vmatprep.subr.bf16.mxu0 %v2180_v0 }
  0x76   : > { %1753 = vmatpush3.bf16.msra.mxu1 %v1947_v38 }
  0x77   : > { %1735 = vmatmul.mubr.bf16.vlgmr.msra.gmra.mrb[0].mxu0 %v370_v29  ;;  %1778 = vmatprep.subr.bf16.mxu1 %v2180_v0 }
  0x78   : > { %1759 = vmatpush3.bf16.msra.mxu0 %v1932_v28  ;;  %1774 = vmatprep.mubr.msk.bf16.mxu0 %vm2181_vm0, %v2180_v0 }
  0x79   : > { %1760 = vmatprep.subr.bf16.mxu0 %v2180_v0 }
  0x7c   : > { %1761 = vmatpush3.bf16.msra.mxu0 %v1934_v30 }
  0x7d   : > { %1762 = vmatprep.subr.bf16.mxu0 %v2180_v0 }
  0x80   : > { %1763 = vmatpush3.bf16.msra.mxu0 %v1936_v31  ;;  %v1569_v31 = vld [vmem:[%s2534_s2 + $0x1] ss:$0 sm:$0xff] }
  0x81   : > { %1764 = vmatprep.subr.bf16.mxu0 %v2180_v0 }
  0x84   : > { %1765 = vmatpush3.bf16.msra.mxu0 %v1938_v32 }
  0x85   : > { %1766 = vmatprep.subr.bf16.mxu0 %v2180_v0 }
  0x88   : > { %1767 = vmatpush3.bf16.msra.mxu0 %v1940_v33 }
  0x89   : > { %1768 = vmatprep.subr.bf16.mxu0 %v2180_v0 }
  0x8c   : > { %1769 = vmatpush3.bf16.msra.mxu0 %v1942_v34 }
  0x8d   : > { %1770 = vmatprep.subr.bf16.mxu0 %v2180_v0 }
  0x90   : > { %1771 = vmatpush3.bf16.msra.mxu0 %v1944_v35 }
  0x91   : > { %1772 = vmatprep.subr.bf16.mxu0 %v2180_v0 }
  0x94   : > { %1773 = vmatpush3.bf16.msra.mxu0 %v1946_v37 }
  0x95   : > { %1798 = vmatprep.subr.bf16.mxu0 %v2180_v0 }
 0x14a   : > { %v1736_v40 = vpop.f32.mrb[0].mxu0 }
 0x14b   : > { %v468_v41 = vadd.f32 %v1736_v40, %v1536_v39  ;;  %v459_v42 = vpop.f32.mrb[1].mxu0 }
 0x14c   : > { %v460_v43 = vadd.f32 %v1536_v39, %v459_v42  ;;  %v1737_v44 = vpop.f32.mrb[2].mxu0  ;;  %v1972_v42 = vld [vmem:[#allocation5 + $0x18] ss:$44 sps:$4 sm:$0xff]  }
 0x14d   : > { %v476_v45 = vmax.f32 %v468_v41, 0.0  ;;  %v471_v46 = vadd.f32 %v1737_v44, %v1536_v39  ;;  %v462_v47 = vpop.f32.mrb[3].mxu0  ;;  %v1973_v44 = vld [vmem:[#allocation5 + $0x70] ss:$44 sps:$4 sm:$0xff]  }
 0x14e   : > { %v474_v48 = vmax.f32 %v460_v43, 0.0  ;;  %v463_v49 = vadd.f32 %v1536_v39, %v462_v47  ;;  %v1976_v47 = vld [vmem:[#allocation5 + $0x178] ss:$44 sps:$4 sm:$0xff]  }
 0x14f   : > { %v477_v50 = vmax.f32 %v471_v46, 0.0  ;;  %v1975_v46 = vld [vmem:[#allocation5 + $0x120] ss:$44 sps:$4 sm:$0xff]  }
 0x150   : > { %v577_v51 = vpack.c.bf16 %v476_v45, %v474_v48  ;;  %v475_v52 = vmax.f32 %v463_v49, 0.0  ;;  %v1974_v45 = vld [vmem:[#allocation5 + $0xc8] ss:$44 sps:$4 sm:$0xff]   ;;  %v1977_v48 = vld [vmem:[#allocation5 + $0x1d0] ss:$44 sps:$4 sm:$0xff]  }
 0x151   : > { %v1978_v49 = vld [vmem:[#allocation5 + $0x228] ss:$44 sps:$4 sm:$0xff]  }
 0x152   : > { %v478_v54 = vpack.c.bf16 %v477_v50, %v475_v52  ;;  %1775 = vmatmul.mubr.bf16.vlgmr.msra.gmra.mrb[4].mxu0 %v577_v51  ;;  %v1979_v50 = vld [vmem:[#allocation5 + $0x280] ss:$44 sps:$4 sm:$0xff]   ;;  %v1980_v51 = vld [vmem:[#allocation5 + $0x1c] ss:$44 sps:$4 sm:$0xff]  }
 0x153   : > { %1814 = vmatprep.mubr.msk.bf16.mxu0 %vm2181_vm0, %v2180_v0  ;;  %1799 = vmatpush3.bf16.msra.mxu0 %v1956_v62  ;;  %v1982_v52 = vld [vmem:[#allocation5 + $0x20] ss:$44 sps:$4 sm:$0xff]   ;;  %v2000_v62 = vld [vmem:[#allocation5 + $0x230] ss:$44 sps:$4 sm:$0xff]  }
 0x154   : > { %1755 = vmatmul.mubr.bf16.vlgmr.msra.gmra.mrb[0].mxu1 %v478_v54  ;;  %1800 = vmatprep.subr.bf16.mxu0 %v2180_v0 }
 0x155   : > { %1779 = vmatpush3.bf16.msra.mxu1 %v1948_v53  ;;  %1794 = vmatprep.mubr.msk.bf16.mxu1 %vm2181_vm0, %v2180_v0  ;;  %v1985_v53 = vld [vmem:[#allocation5 + $0x78] ss:$44 sps:$4 sm:$0xff]  }
 0x156   : > { %1780 = vmatprep.subr.bf16.mxu1 %v2180_v0 }
 0x157   : > { %1801 = vmatpush3.bf16.msra.mxu0 %v1958_v1  ;;  %v2003_v1 = vld [vmem:[#allocation5 + $0x288] ss:$44 sps:$4 sm:$0xff]  }
 0x158   : > { %1802 = vmatprep.subr.bf16.mxu0 %v2180_v0 }
 0x159   : > { %1781 = vmatpush3.bf16.msra.mxu1 %v1949_v55  ;;  %v1988_v55 = vld [vmem:[#allocation5 + $0xd0] ss:$44 sps:$4 sm:$0xff]  }
 0x15a   : > { %1782 = vmatprep.subr.bf16.mxu1 %v2180_v0 }
 0x15b   : > { %1803 = vmatpush3.bf16.msra.mxu0 %v1960_v3  ;;  %v1267_v3 = vmul.f32 0.5, %v2360_v18  ;;  %v2015_v18 = vld [vmem:[#allocation5 + $0x130] ss:$44 sps:$4 sm:$0xff]  }
 0x15c   : > { %1804 = vmatprep.subr.bf16.mxu0 %v2180_v0 }
 0x15d   : > { %1783 = vmatpush3.bf16.msra.mxu1 %v1950_v56  ;;  %v1986_v56 = vld [vmem:[#allocation5 + $0xcc] ss:$44 sps:$4 sm:$0xff]  }
 0x15e   : > { %1784 = vmatprep.subr.bf16.mxu1 %v2180_v0 }
 0x15f   : > { %1805 = vmatpush3.bf16.msra.mxu0 %v1962_v5  ;;  %v2182_v5 = vmov 0  }
 0x160   : > { %1806 = vmatprep.subr.bf16.mxu0 %v2180_v0 }
 0x161   : > { %1785 = vmatpush3.bf16.msra.mxu1 %v1951_v57  ;;  %v1991_v57 = vld [vmem:[#allocation5 + $0x128] ss:$44 sps:$4 sm:$0xff]  }
 0x162   : > { %1786 = vmatprep.subr.bf16.mxu1 %v2180_v0 }
 0x163   : > { %1807 = vmatpush3.bf16.msra.mxu0 %v1964_v7  ;;  %v2006_v7 = vld [vmem:[#allocation5 + $0x28] ss:$44 sps:$4 sm:$0xff]  }
 0x164   : > { %1808 = vmatprep.subr.bf16.mxu0 %v2180_v0 }
 0x165   : > { %1787 = vmatpush3.bf16.msra.mxu1 %v1952_v58  ;;  %v1989_v58 = vld [vmem:[#allocation5 + $0x124] ss:$44 sps:$4 sm:$0xff]  }
 0x166   : > { %1788 = vmatprep.subr.bf16.mxu1 %v2180_v0 }
 0x167   : > { %1809 = vmatpush3.bf16.msra.mxu0 %v1966_v9  ;;  %v2009_v9 = vld [vmem:[#allocation5 + $0x80] ss:$44 sps:$4 sm:$0xff]  }
 0x168   : > { %1810 = vmatprep.subr.bf16.mxu0 %v2180_v0 }
 0x169   : > { %1789 = vmatpush3.bf16.msra.mxu1 %v1953_v59  ;;  %v1994_v59 = vld [vmem:[#allocation5 + $0x180] ss:$44 sps:$4 sm:$0xff]  }
 0x16a   : > { %1790 = vmatprep.subr.bf16.mxu1 %v2180_v0 }
 0x16b   : > { %1811 = vmatpush3.bf16.msra.mxu0 %v1968_v11  ;;  %v2012_v11 = vld [vmem:[#allocation5 + $0xd8] ss:$44 sps:$4 sm:$0xff]  }
 0x16c   : > { %1812 = vmatprep.subr.bf16.mxu0 %v2180_v0 }
 0x16d   : > { %1791 = vmatpush3.bf16.msra.mxu1 %v1954_v60  ;;  %v1997_v60 = vld [vmem:[#allocation5 + $0x1d8] ss:$44 sps:$4 sm:$0xff]  }
 0x16e   : > { %1792 = vmatprep.subr.bf16.mxu1 %v2180_v0 }
 0x16f   : > { %1813 = vmatpush3.bf16.msra.mxu0 %v1970_v13  ;;  %v2018_v13 = vld [vmem:[#allocation5 + $0x188] ss:$44 sps:$4 sm:$0xff]  }
 0x170   : > { %1838 = vmatprep.subr.bf16.mxu0 %v2180_v0 }
 0x171   : > { %1793 = vmatpush3.bf16.msra.mxu1 %v1955_v61  ;;  %v1995_v61 = vld [vmem:[#allocation5 + $0x1d4] ss:$44 sps:$4 sm:$0xff]  }
 0x172   : > { %1818 = vmatprep.subr.bf16.mxu1 %v2180_v0 }
 0x174   : > { %1795 = vmatmul.mubr.bf16.vlgmr.msra.gmra.mrb[4].mxu1 %v478_v54  ;;  %v1983_v54 = vld [vmem:[#allocation5 + $0x74] ss:$44 sps:$4 sm:$0xff]  }
 0x175   : > { %1834 = vmatprep.mubr.msk.bf16.mxu1 %vm2181_vm0, %v2180_v0  ;;  %1819 = vmatpush3.bf16.msra.mxu1 %v1957_v63  ;;  %v1998_v63 = vld [vmem:[#allocation5 + $0x22c] ss:$44 sps:$4 sm:$0xff]  }
 0x176   : > { %1820 = vmatprep.subr.bf16.mxu1 %v2180_v0 }
 0x179   : > { %1821 = vmatpush3.bf16.msra.mxu1 %v1959_v2  ;;  %v2001_v2 = vld [vmem:[#allocation5 + $0x284] ss:$44 sps:$4 sm:$0xff]  }
 0x17a   : > { %1822 = vmatprep.subr.bf16.mxu1 %v2180_v0 }
 0x17d   : > { %1823 = vmatpush3.bf16.msra.mxu1 %v1961_v4  ;;  %v1268_v4 = vmul.f32 0.5, %v2362_v19  ;;  %v2013_v19 = vld [vmem:[#allocation5 + $0x12c] ss:$44 sps:$4 sm:$0xff]  }
 0x17e   : > { %1824 = vmatprep.subr.bf16.mxu1 %v2180_v0 }
 0x181   : > { %1825 = vmatpush3.bf16.msra.mxu1 %v1963_v6  ;;  %v2004_v6 = vld [vmem:[#allocation5 + $0x24] ss:$44 sps:$4 sm:$0xff]  }
 0x182   : > { %1826 = vmatprep.subr.bf16.mxu1 %v2180_v0 }
 0x185   : > { %1827 = vmatpush3.bf16.msra.mxu1 %v1965_v8  ;;  %v1269_v8 = vpack.c.bf16 %v1268_v4, %v1267_v3 }
 0x186   : > { %1828 = vmatprep.subr.bf16.mxu1 %v2180_v0 }
 0x189   : > { %1829 = vmatpush3.bf16.msra.mxu1 %v1967_v10  ;;  %v2007_v10 = vld [vmem:[#allocation5 + $0x7c] ss:$44 sps:$4 sm:$0xff]  }
 0x18a   : > { %1830 = vmatprep.subr.bf16.mxu1 %v2180_v0 }
 0x18d   : > { %1831 = vmatpush3.bf16.msra.mxu1 %v1969_v12  ;;  %v2010_v12 = vld [vmem:[#allocation5 + $0xd4] ss:$44 sps:$4 sm:$0xff]  }
 0x18e   : > { %1832 = vmatprep.subr.bf16.mxu1 %v2180_v0 }
 0x191   : > { %1833 = vmatpush3.bf16.msra.mxu1 %v1971_v14  ;;  %v2016_v14 = vld [vmem:[#allocation5 + $0x184] ss:$44 sps:$4 sm:$0xff]  }
 0x192   : > { %1161 = vmatprep.subr.bf16.mxu1 %v1982_v52 }
 0x225   : > { %v660_v15 = vpop.f32.mrb[4].mxu0 }
 0x226   : > { %v1776_v16 = vpop.f32.mrb[5].mxu0 }
 0x227   : > { %v561_v17 = vpop.f32.mrb[0].mxu1  ;;  %v663_v20 = vpop.f32.mrb[6].mxu0  ;;  %v2019_v16 = vld [vmem:[#allocation5 + $0x1dc] ss:$44 sps:$4 sm:$0xff]  }
 0x228   : > { %v570_v21 = vrot.slane %v561_v17, 7  ;;  %v1756_v22 = vpop.f32.mrb[1].mxu1  ;;  %v1777_v23 = vpop.f32.mrb[7].mxu0  ;;  %v2024_v17 = vld [vmem:[#allocation5 + $0x238] ss:$44 sps:$4 sm:$0xff]  }
 0x229   : > { %v564_v24 = vpop.f32.mrb[2].mxu1  ;;  %v2025_v22 = vld [vmem:[#allocation5 + $0x28c] ss:$44 sps:$4 sm:$0xff]  }
 0x22a   : > { %v575_v25 = vsel %vm574_vm1, 0.0, %v570_v21  ;;  %v571_v26 = vrot.slane %v564_v24, 7  ;;  %v1757_v27 = vpop.f32.mrb[3].mxu1  ;;  %v2027_v21 = vld [vmem:[#allocation5 + $0x290] ss:$44 sps:$4 sm:$0xff]  }
 0x22b   : > { %v667_v28 = vadd.f32 %v660_v15, %v575_v25  ;;  %v2021_v15 = vld [vmem:[#allocation5 + $0x1e0] ss:$44 sps:$4 sm:$0xff]  }
 0x22c   : > { %v576_v29 = vsel %vm574_vm1, 0.0, %v571_v26 }
 0x22d   : > { %v668_v30 = vadd.f32 %v663_v20, %v576_v29  ;;  %v2022_v20 = vld [vmem:[#allocation5 + $0x234] ss:$44 sps:$4 sm:$0xff]  }
 0x247   : > { %v751_v32 = vpop.f32.mrb[4].mxu1 }
 0x248   : > { %v758_v33 = vadd.f32 %v751_v32, %v667_v28  ;;  %v1796_v34 = vpop.f32.mrb[5].mxu1 }
 0x249   : > { %v754_v35 = vpop.f32.mrb[6].mxu1 }
 0x24a   : > { %v766_v36 = vadd.f32 %v1569_v31, %v758_v33  ;;  %v759_v37 = vadd.f32 %v754_v35, %v668_v30  ;;  %v1797_v38 = vpop.f32.mrb[7].mxu1 }
 0x24c   : > { %v767_v39 = vadd.f32 %v1569_v31, %v759_v37  ;;  %v768_v40 = vmax.f32 %v766_v36, 0.0 }
 0x24e   : > { %v769_v41 = vmax.f32 %v767_v39, 0.0 }
 0x250   : > { %v770_v43 = vpack.c.bf16 %v769_v41, %v768_v40  ;;  %v1594_v41 = vld [vmem:[%s2534_s2 + $0x2] ss:$0 sm:$0xff] }
 0x252   : > { %1815 = vmatmul.mubr.bf16.vlgmr.msra.gmra.mrb[8].mxu0 %v770_v43  ;;  %1835 = vmatmul.mubr.bf16.vlgmr.msra.gmra.mrb[8].mxu1 %v770_v43 }
 0x253   : > { %1839 = vmatpush3.bf16.msra.mxu0 %v1972_v42  ;;  %1854 = vmatprep.mubr.msk.bf16.mxu0 %vm2181_vm0, %v2180_v0 }
 0x254   : > { %1840 = vmatprep.subr.bf16.mxu0 %v2180_v0  ;;  %1162 = vmatpush1.bf16.msra.mxu1 %v1980_v51 }
 0x255   : > { %1163 = vmatprep.subr.bf16.mxu1 %v1985_v53  ;;  %1193 = vmatprep.mubr.bf16.mxu1 %v2182_v5 }
 0x257   : > { %1841 = vmatpush3.bf16.msra.mxu0 %v1973_v44 }
 0x258   : > { %1842 = vmatprep.subr.bf16.mxu0 %v2180_v0  ;;  %1164 = vmatpush1.bf16.msra.mxu1 %v1983_v54 }
 0x259   : > { %1165 = vmatprep.subr.bf16.mxu1 %v1988_v55 }
 0x25b   : > { %1843 = vmatpush3.bf16.msra.mxu0 %v1974_v45 }
 0x25c   : > { %1844 = vmatprep.subr.bf16.mxu0 %v2180_v0  ;;  %1166 = vmatpush1.bf16.msra.mxu1 %v1986_v56 }
 0x25d   : > { %1167 = vmatprep.subr.bf16.mxu1 %v1991_v57  ;;  %v1071_v57 = vlaneseq }
 0x25f   : > { %1845 = vmatpush3.bf16.msra.mxu0 %v1975_v46 }
 0x260   : > { %1846 = vmatprep.subr.bf16.mxu0 %v2180_v0  ;;  %1168 = vmatpush1.bf16.msra.mxu1 %v1989_v58  ;;  %v2446_v58 = vshrl.u32 %v1071_v57, 7 }
 0x261   : > { %1169 = vmatprep.subr.bf16.mxu1 %v1994_v59 }
 0x262   : > { %v1073_v59 = vsub.s32 0, %v2446_v58 }
 0x263   : > { %1847 = vmatpush3.bf16.msra.mxu0 %v1976_v47 }
 0x264   : > { %1848 = vmatprep.subr.bf16.mxu0 %v2180_v0 }
 0x267   : > { %1849 = vmatpush3.bf16.msra.mxu0 %v1977_v48 }
 0x268   : > { %1850 = vmatprep.subr.bf16.mxu0 %v2180_v0 }
 0x26b   : > { %1851 = vmatpush3.bf16.msra.mxu0 %v1978_v49 }
 0x26c   : > { %1852 = vmatprep.subr.bf16.mxu0 %v2180_v0  ;;  %v1992_v0 = vld [vmem:[#allocation5 + $0x17c] ss:$44 sps:$4 sm:$0xff]  }
 0x26d   : > { %1170 = vmatpush1.bf16.msra.mxu1 %v1992_v0  ;;  %v355_v0 = vld [vmem:[%s2534_s2 + $0x3] sm:$0x3] }
 0x26e   : > { %1171 = vmatprep.subr.bf16.mxu1 %v1997_v60  ;;  %v1077_v60 = vsub.s32 1, %v2446_v58 }
 0x26f   : > { %1853 = vmatpush3.bf16.msra.mxu0 %v1979_v50 }
 0x270   : > { %1361 = vmatprep.subr.bf16.mxu0 %v2006_v7 }
 0x271   : > { %1172 = vmatpush1.bf16.msra.mxu1 %v1995_v61  ;;  %v1074_v61 = vrot.slane %v355_v0, %v1073_v59 }
 0x272   : > { %1855 = vmatmul.mubr.bf16.vlgmr.msra.gmra.mrb[12].mxu0 %v770_v43  ;;  %1173 = vmatprep.subr.bf16.mxu1 %v2000_v62  ;;  %v1078_v62 = vrot.slane %v355_v0, %v1077_v60 }
 0x273   : > { %1393 = vmatprep.mubr.bf16.mxu0 %v2182_v5  ;;  %1362 = vmatpush1.bf16.msra.mxu0 %v2004_v6 }
 0x274   : > { %1363 = vmatprep.subr.bf16.mxu0 %v2009_v9 }
 0x275   : > { %1174 = vmatpush1.bf16.msra.mxu1 %v1998_v63 }
 0x276   : > { %1175 = vmatprep.subr.bf16.mxu1 %v2003_v1 }
 0x277   : > { %1364 = vmatpush1.bf16.msra.mxu0 %v2007_v10 }
 0x278   : > { %1365 = vmatprep.subr.bf16.mxu0 %v2012_v11 }
 0x279   : > { %1176 = vmatpush1.bf16.msra.mxu1 %v2001_v2 }
 0x27b   : > { %1366 = vmatpush1.bf16.msra.mxu0 %v2010_v12 }
 0x27c   : > { %1367 = vmatprep.subr.bf16.mxu0 %v2015_v18 }
 0x27f   : > { %1368 = vmatpush1.bf16.msra.mxu0 %v2013_v19 }
 0x280   : > { %1369 = vmatprep.subr.bf16.mxu0 %v2018_v13 }
 0x283   : > { %1370 = vmatpush1.bf16.msra.mxu0 %v2016_v14 }
 0x284   : > { %1371 = vmatprep.subr.bf16.mxu0 %v2021_v15 }
 0x287   : > { %1372 = vmatpush1.bf16.msra.mxu0 %v2019_v16 }
 0x288   : > { %1373 = vmatprep.subr.bf16.mxu0 %v2024_v17 }
 0x28b   : > { %1374 = vmatpush1.bf16.msra.mxu0 %v2022_v20 }
 0x28c   : > { %1375 = vmatprep.subr.bf16.mxu0 %v2027_v21 }
 0x28f   : > { %1376 = vmatpush1.bf16.msra.mxu0 %v2025_v22 }
 0x292   : > { %1394 = vmatmul.mubr.bf16.vlgmr.msra.gmra.mrb[16].mxu0 %v1269_v8 }
 0x325   : > { %v853_v23 = vpop.f32.mrb[8].mxu0  ;;  %v950_v24 = vpop.f32.mrb[8].mxu1 }
 0x326   : > { %v862_v25 = vrot.slane %v853_v23, 7  ;;  %v1816_v26 = vpop.f32.mrb[9].mxu0  ;;  %v1836_v27 = vpop.f32.mrb[9].mxu1 }
 0x327   : > { %v856_v28 = vpop.f32.mrb[10].mxu0  ;;  %v953_v29 = vpop.f32.mrb[10].mxu1 }
 0x328   : > { %v866_v30 = vsel %vm574_vm1, 0.0, %v862_v25  ;;  %v863_v31 = vrot.slane %v856_v28, 7  ;;  %v1817_v32 = vpop.f32.mrb[11].mxu0  ;;  %v1837_v33 = vpop.f32.mrb[11].mxu1 }
 0x329   : > { %v957_v34 = vadd.f32 %v950_v24, %v866_v30 }
 0x32a   : > { %v867_v35 = vsel %vm574_vm1, 0.0, %v863_v31 }
 0x32b   : > { %v958_v36 = vadd.f32 %v953_v29, %v867_v35 }
 0x345   : > { %v1041_v37 = vpop.f32.mrb[12].mxu0 }
 0x346   : > { %v1050_v38 = vrot.slane %v1041_v37, 1  ;;  %v1856_v39 = vpop.f32.mrb[13].mxu0 }
 0x347   : > { %v1044_v40 = vpop.f32.mrb[14].mxu0 }
 0x348   : > { %v1055_v42 = vsel %vm1054_vm2, %v1050_v38, 0.0  ;;  %v1051_v43 = vrot.slane %v1044_v40, 1  ;;  %v1857_v44 = vpop.f32.mrb[15].mxu0 }
 0x349   : > { %v1057_v45 = vadd.f32 %v1055_v42, %v957_v34 }
 0x34a   : > { %v1056_v46 = vsel %vm1054_vm2, %v1051_v43, 0.0 }
 0x34b   : > { %v1065_v47 = vadd.f32 %v1594_v41, %v1057_v45  ;;  %v1058_v48 = vadd.f32 %v1056_v46, %v958_v36 }
 0x34d   : > { %v1066_v49 = vadd.f32 %v1594_v41, %v1058_v48  ;;  %v1067_v50 = vmax.f32 %v1065_v47, 0.0  ;;  %v356_v48 = vld [vmem:[%s2534_s2 + $0x5] sm:$0x3] }
 0x34f   : > { %v1068_v51 = vmax.f32 %v1066_v49, 0.0  ;;  %v1274_v49 = vrot.slane %v356_v48, %v1073_v59 }
 0x351   : > { %v1069_v52 = vpack.c.bf16 %v1068_v51, %v1067_v50  ;;  %v1278_v50 = vrot.slane %v356_v48, %v1077_v60 }
 0x353   : > { %1194 = vmatmul.mubr.bf16.vlgmr.msra.gmra.mrb[12].mxu1 %v1069_v52 }
 0x365   : > { %v2438_v53 = vpop.f32.mrb[16].mxu0 }
 0x366   : > { %v2440_v54 = vpop.f32.mrb[17].mxu0  ;;  %v1396_v58 = vadd.f32 %v2438_v53, %v1274_v49 }
 0x367   : > { %v2442_v55 = vpop.f32.mrb[18].mxu0 }
 0x368   : > { %v2444_v56 = vpop.f32.mrb[19].mxu0  ;;  %v1400_v53 = vadd.f32 %v2442_v55, %v1274_v49 }
 0x426   : > { %v1195_v63 = vpop.f32.mrb[12].mxu1 }
 0x427   : > { %v2453_v1 = vadd.f32 %v1195_v63, %v1074_v61  ;;  %v1197_v2 = vpop.f32.mrb[13].mxu1 }
 0x428   : > { %v2455_v3 = vadd.f32 %v1197_v2, %v1078_v62  ;;  %v1199_v4 = vpop.f32.mrb[14].mxu1 }
 0x429   : > { %v1204_v5 = vrot.slane %v2453_v1, 4  ;;  %v2458_v6 = vadd.f32 %v1199_v4, %v1074_v61  ;;  %v1201_v7 = vpop.f32.mrb[15].mxu1 }
 0x42a   : > { %v1210_v8 = vrot.slane %v2455_v3, 4  ;;  %v2461_v9 = vadd.f32 %v1201_v7, %v1078_v62  ;;  %v1398_v62 = vadd.f32 %v2440_v54, %v1278_v50 }
 0x42b   : > { %v1205_v10 = vadd.f32 %v1204_v5, %v2453_v1  ;;  %v1216_v11 = vrot.slane %v2458_v6, 4 }
 0x42c   : > { %v1211_v12 = vadd.f32 %v1210_v8, %v2455_v3  ;;  %v1222_v18 = vrot.slane %v2461_v9, 4 }
 0x42d   : > { %v1206_v19 = vrot.slane %v1205_v10, 2  ;;  %v1217_v13 = vadd.f32 %v1216_v11, %v2458_v6 }
 0x42e   : > { %v1212_v14 = vrot.slane %v1211_v12, 2  ;;  %v1223_v15 = vadd.f32 %v1222_v18, %v2461_v9 }
 0x42f   : > { %v1207_v16 = vadd.f32 %v1206_v19, %v1205_v10  ;;  %v1218_v17 = vrot.slane %v1217_v13, 2  ;;  %v1402_v10 = vadd.f32 %v2444_v56, %v1278_v50 }
 0x430   : > { %v1213_v20 = vadd.f32 %v1212_v14, %v1211_v12  ;;  %v1224_v21 = vrot.slane %v1223_v15, 2 }
 0x431   : > { %v1208_v22 = vrot.slane %v1207_v16, 1  ;;  %v1219_v23 = vadd.f32 %v1218_v17, %v1217_v13 }
 0x432   : > { %v1214_v24 = vrot.slane %v1213_v20, 1  ;;  %v1225_v25 = vadd.f32 %v1224_v21, %v1223_v15 }
 0x433   : > { %v1209_v26 = vadd.f32 %v1208_v22, %v1207_v16  ;;  %v1220_v27 = vrot.slane %v1219_v23, 1 }
 0x434   : > { %v1215_v28 = vadd.f32 %v1214_v24, %v1213_v20  ;;  %v1226_v29 = vrot.slane %v1225_v25, 1 }
 0x435   : > { %v1611_v30 = vmul.f32 -0.125, %v1209_v26  ;;  %v1221_v31 = vadd.f32 %v1220_v27, %v1219_v23 }
 0x436   : > { %v1612_v32 = vmul.f32 -0.125, %v1215_v28  ;;  %v1227_v33 = vadd.f32 %v1226_v29, %v1225_v25 }
 0x437   : > { %v1237_v34 = vmul.f32 1.442695, %v1611_v30  ;;  %v1613_v35 = vmul.f32 -0.125, %v1221_v31 }
 0x438   : > { %v1239_v36 = vmul.f32 1.442695, %v1612_v32  ;;  %v1614_v37 = vmul.f32 -0.125, %v1227_v33 }
 0x439   : > { %2028 = vpow2.f32 %v1237_v34  ;;  %v1241_v38 = vmul.f32 1.442695, %v1613_v35 }
 0x43a   : > { %2030 = vpow2.f32 %v1239_v36  ;;  %v1243_v39 = vmul.f32 1.442695, %v1614_v37 }
 0x43b   : > { %2032 = vpow2.f32 %v1241_v38 }
 0x43c   : > { %2034 = vpow2.f32 %v1243_v39 }
 0x443   : > { %v2029_v40 = vpop.eup %2028 }
 0x444   : > { %v2031_v41 = vpop.eup %2030  ;;  %v1245_v42 = vadd.f32 1.0, %v2029_v40 }
 0x445   : > { %v2033_v43 = vpop.eup %2032  ;;  %v1246_v44 = vadd.f32 1.0, %v2031_v41 }
 0x446   : > { %v2035_v45 = vpop.eup %2034  ;;  %2036 = vrcp.f32 %v1245_v42  ;;  %v1247_v46 = vadd.f32 1.0, %v2033_v43 }
 0x447   : > { %2038 = vrcp.f32 %v1246_v44  ;;  %v1248_v47 = vadd.f32 1.0, %v2035_v45 }
 0x448   : > { %2040 = vrcp.f32 %v1247_v46 }
 0x449   : > { %2042 = vrcp.f32 %v1248_v47 }
 0x450   : > { %v2037_v51 = vpop.eup %2036 }
 0x451   : > { %v2039_v52 = vpop.eup %2038  ;;  %v1257_v57 = vmul.f32 0.2, %v2037_v51 }
 0x452   : > { %v2041_v0 = vpop.eup %2040  ;;  %v1258_v61 = vmul.f32 0.2, %v2039_v52 }
 0x453   : > { %v2043_v63 = vpop.eup %2042  ;;  %v1261_v2 = vmul.f32 %v1257_v57, %v2453_v1  ;;  %v1259_v4 = vmul.f32 0.2, %v2041_v0 }
 0x454   : > { %v1262_v5 = vmul.f32 %v1258_v61, %v2455_v3  ;;  %v1260_v7 = vmul.f32 0.2, %v2043_v63 }
 0x455   : > { %v1404_v8 = vadd.f32 %v1396_v58, %v1261_v2  ;;  %v1263_v59 = vmul.f32 %v1259_v4, %v2458_v6 }
 0x456   : > { %v1405_v60 = vadd.f32 %v1398_v62, %v1262_v5  ;;  %v1264_v54 = vmul.f32 %v1260_v7, %v2461_v9 }
 0x457   : > { %v1406_v1 = vadd.f32 %v1400_v53, %v1263_v59 }
 0x458   : > { %v1641_v11 = vpack.c.bf16 %v1405_v60, %v1404_v8  ;;  %v1407_v3 = vadd.f32 %v1402_v10, %v1264_v54 }
 0x45a   : > { %1424 = vst [vmem:[%s204_s29] sm:$0xff] %v1641_v11  ;;  %v1642_v55 = vpack.c.bf16 %v1407_v3, %v1406_v1 }
 0x45c   : > { %1425 = vst [vmem:[%s204_s29 + $0x8] sm:$0xff] %v1642_v55 }
 0x45d   : > { %2115 = shalt.err (!%p2112_p7)
}
 0x45e   : > { %s2116_s25 = scalar_lea.hbm %s2488_s8, 256  ;;  %s2120_s10 = scalar_lea.hbm %s2535_s3, 512 }
 0x45f   : > { %p2117_p9 = scmp.ne.s32.totalorder %s2488_s8, %s2116_s25  ;;  %p2121_p5 = scmp.lt.u32.totalorder %s2488_s8, %s2535_s3 }
 0x460   : > { %p2122_p11 = scmp.lt.u32.totalorder %s2120_s10, %s2116_s25  ;;  %p2124_p4 = scmp.lt.u32.totalorder %s2116_s25, %s2488_s8 }
 0x461   : > { %p2118_p2 = pnand %p2117_p9, %p2297_p12 }
 0x462   : > { %p2123_p1 = por %p2122_p11, %p2121_p5 }
 0x463   : > { %p2119_p0 = pneg %p2118_p2 }
 0x464   : > { %p2125_p6 = por %p2124_p4, %p2123_p1 }
 0x466   : > { %p2126_p8 = pnand %p2125_p6, %p2119_p0 }
 0x468   : > { %2129 = shalt.err (!%p2126_p8)
}
 0x469   : > { %s2184_s28 = smov 128   ;;  %s2185_s29 = smov 8  }
 0x46a   : > { %1864 = dma.vmem_to_hbm [thread:$0]  (%p2297_p12), %s2483_s23, 256, %s2488_s8, %s1427_s9, %s2184_s28, %s2184_s28, %s2185_s29  }
 0x46b PF: > { %s1456_s30 = sand.u32 1, %s2160_s12   ;;  %p2550_p10 = scmp.ne.s32.totalorder %s2540_s19, 0 }
 0x46c   : > { %p2551_p13 = scmp.ge.s32.totalorder %s2172_s15, 2  ;;  %s1457_s22 = scalar_lea.sflag [#allocation4], %s1456_s30 }
 0x46e   : > { %p1875_p3 = pnand %p2551_p13, %p2550_p10 }
 0x470   : > { %2155 = dma.done.wait (!%p1875_p3), %s1457_s22, 256  }
 0x471   : > { %2157 = vsyncadd (!%p1875_p3), %s1457_s22, 4294967040  ;;  %p17_p7 = scmp.ge.s32.totalorder %s2262_s24, 4   ;;  %s2552_s12 = smov %s2164_s13 }
 0x472   : > { %s2553_s13 = smov %s2168_s14  ;;  %s2554_s14 = smov %s2293_s17 }
 0x473   : > { %s2555_s15 = smov %s2262_s24  ;;  %19 = sbr.rel (!%p17_p7) target bundleno = 6 (0x6), region = 81 }
 0x47a   :  { %1462 = vsyncpa [#allocation3], 1 }
 0x47b   :  { %1464 = vsyncpa [#allocation3 + $0x1], 1 }
 0x47c   :  { %1465 = vsyncpa [#allocation6], 1 }
 0x47d   :  { %1466 = vsyncpa [#allocation4], 1 }
 0x47e   :  { %1468 = vsyncpa [#allocation4 + $0x1], 1 }

</bundles_post_ra>
